<compile_context>
chip_gen: v7x
topology: tpu7x:2x2x1
jax: 0.10.0
libtpu: 0.0.40
codegen_flags: <defaults>
</compile_context>

<pallas_src>
import jax
import jax.numpy as jnp
import numpy as np
from jax.experimental import pallas as pl
from jax.experimental.pallas import tpu as pltpu

K = 5        # conv kernel size
PAD = 2      # 'same' padding
CPAD = 128   # lane-dense channel width


# ----------------------------------------------------------------------------
# Fused kernel: [conv(k=5, same) + bias + ReLU + maxpool(2,2)] x 3
# ----------------------------------------------------------------------------
def _encoder_kernel(x_ref, w1_ref, b1_ref, w2_ref, b2_ref, w3_ref, b3_ref,
                    o_ref):
    # x_ref : (Bt, T, 128)        channel-padded input tile
    # w*_ref: (K*128, 128)        im2col conv weights (zero-padded)
    # b*_ref: (1, 128)            biases (zero-padded)
    # o_ref : (Bt, T//8, 128)     channel-padded output tile
    Bt, T0, C = x_ref.shape

    def conv_relu_pool(a, w_ref, b_ref):
        # a: (Bt, T, C) -> (Bt, T//2, C)
        T = a.shape[1]
        # Time halo (pad=2) built in VMEM -- no HBM padding pass.
        z = jnp.zeros((Bt, PAD, C), jnp.float32)
        ap = jnp.concatenate([z, a, z], axis=1)                 # (Bt, T+4, C)
        # im2col patch matrix -> ONE batched lane-dense MXU matmul
        # (contraction width K*C = 640, covering the whole batch tile).
        patches = jnp.concatenate([ap[:, k:k + T, :] for k in range(K)],
                                  axis=-1)                      # (Bt, T, K*C)
        y = jnp.dot(patches.reshape(Bt * T, K * C), w_ref[...],
                    preferred_element_type=jnp.float32)         # (Bt*T, C)
        y = y.reshape(Bt, T, C)
        y = jnp.maximum(y + b_ref[...], 0.0)                    # bias + ReLU
        # MaxPool1d(2, 2): pair-reduce, no strided sublane slices.
        return jnp.max(y.reshape(Bt, T // 2, 2, C), axis=2)     # (Bt, T//2, C)

    a = x_ref[...]                                              # (Bt, T0, C)
    a = conv_relu_pool(a, w1_ref, b1_ref)
    a = conv_relu_pool(a, w2_ref, b2_ref)
    a = conv_relu_pool(a, w3_ref, b3_ref)
    o_ref[...] = a.astype(o_ref.dtype)


# ----------------------------------------------------------------------------
# Host-side packing / wrapper
# ----------------------------------------------------------------------------
def _pack_conv(w, b):
    """w: (K, cin, cout) tap-major, b: (cout,) ->
    zero-padded im2col weight (K*128, 128) and bias (1, 128)."""
    k, cin, cout = w.shape
    wp = jnp.zeros((k, CPAD, CPAD), jnp.float32).at[:, :cin, :cout].set(w)
    bp = jnp.zeros((1, CPAD), jnp.float32).at[0, :cout].set(b)
    return wp.reshape(k * CPAD, CPAD), bp


def _pick_batch_tile(B, max_bt=8):
    """Prefer >=2 grid steps (both v7x TCs busy) with several batch elements
    per step to amortize per-grid-step overhead."""
    for bt in range(min(max_bt, B), 0, -1):
        if B % bt == 0 and B // bt >= 2:
            return bt
    return B


def conv1d_encoder_forward(x, params):
    """x: (B, T, input_dim) -> (B, T//8, 4*n_filters). Dropout = identity."""
    x = x.astype(jnp.float32)
    B, T, cin = x.shape
    assert T % 8 == 0, "three MaxPool1d(2,2) stages need T divisible by 8"
    cout_final = params[-1][0].shape[2]
    to = T // 8

    # Single channel pad (once, before the fused kernel) -> lane-dense blocks.
    xp = jnp.pad(x, ((0, 0), (0, 0), (0, CPAD - cin)))

    packed = []
    for (w, b) in params:
        packed.extend(_pack_conv(w, b))

    bt = _pick_batch_tile(B)
    wspec = pl.BlockSpec((K * CPAD, CPAD), lambda i: (0, 0))
    bspec = pl.BlockSpec((1, CPAD), lambda i: (0, 0))

    out = pl.pallas_call(
        _encoder_kernel,
        out_shape=jax.ShapeDtypeStruct((B, to, CPAD), jnp.float32),
        grid=(B // bt,),
        in_specs=[
            pl.BlockSpec((bt, T, CPAD), lambda i: (i, 0, 0)),
            wspec, bspec, wspec, bspec, wspec, bspec,
        ],
        out_specs=pl.BlockSpec((bt, to, CPAD), lambda i: (i, 0, 0)),
        compiler_params=pltpu.CompilerParams(
            dimension_semantics=("parallel",)),
    )(xp, *packed)

    # Drop the lane padding (tiny host-side slice).
    return out[:, :, :cout_final]


# ----------------------------------------------------------------------------
# Parameter construction (deterministic, PyTorch-style kaiming-uniform bounds)
# ----------------------------------------------------------------------------
def init_conv_params(key, cin, cout, k=K):
    bound = 1.0 / np.sqrt(cin * k)
    kw, kb = jax.random.split(key)
    # PyTorch Conv1d weight is (Cout, Cin, K); store tap-major (K, Cin, Cout).
    w_torch_layout = jax.random.uniform(kw, (cout, cin, k), jnp.float32,
                                        minval=-bound, maxval=bound)
    w = jnp.transpose(w_torch_layout, (2, 1, 0))  # (K, Cin, Cout)
    b = jax.random.uniform(kb, (cout,), jnp.float32, minval=-bound, maxval=bound)
    return w, b


# ----------------------------------------------------------------------------
# Pure-JAX reference for correctness checking
# ----------------------------------------------------------------------------
def reference_forward(x, params):
    x = x.astype(jnp.float32)
    for (w, b) in params:
        k, cin, cout = w.shape
        pad = (k - 1) // 2
        xp = jnp.pad(x, ((0, 0), (pad, pad), (0, 0)))
        T = x.shape[1]
        y = jnp.zeros((x.shape[0], T, cout), jnp.float32)
        for kk in range(k):
            y = y + jnp.einsum("btc,cd->btd", xp[:, kk:kk + T, :], w[kk])
        y = jnp.maximum(y + b, 0.0)
        x = jnp.maximum(y[:, 0::2, :], y[:, 1::2, :])
    return x


if __name__ == "__main__":
    key = jax.random.PRNGKey(0)
    k_x, k1, k2, k3 = jax.random.split(key, 4)

    B, T, input_dim, n_filters = 2, 16, 8, 16
    x = jax.random.normal(k_x, (B, T, input_dim), jnp.float32)

    params = [
        init_conv_params(k1, input_dim, n_filters),
        init_conv_params(k2, n_filters, n_filters * 2),
        init_conv_params(k3, n_filters * 2, n_filters * 4),
    ]

    out = jax.block_until_ready(conv1d_encoder_forward(x, params))
    ref = reference_forward(x, params)

    assert out.shape == (B, T // 8, n_filters * 4), out.shape
    np.testing.assert_allclose(np.asarray(out), np.asarray(ref),
                               rtol=1e-5, atol=1e-5)

    print("KERNEL_OK")
</pallas_src>

<mosaic_0001>
module attributes {stable_mosaic.version = 11 : i64} {
  func.func @_encoder_kernel(%arg0: i32, %arg1: memref<1x16x128xf32, #tpu.memory_space<vmem>>, %arg2: memref<640x128xf32, #tpu.memory_space<vmem>>, %arg3: memref<1x128xf32, #tpu.memory_space<vmem>>, %arg4: memref<640x128xf32, #tpu.memory_space<vmem>>, %arg5: memref<1x128xf32, #tpu.memory_space<vmem>>, %arg6: memref<640x128xf32, #tpu.memory_space<vmem>>, %arg7: memref<1x128xf32, #tpu.memory_space<vmem>>, %arg8: memref<1x2x128xf32, #tpu.memory_space<vmem>>) attributes {dimension_semantics = [#tpu.dimension_semantics<parallel>], iteration_bounds = array<i64: 2>, scalar_prefetch = 0 : i64, scratch_operands = 0 : i64, tpu.core_type = #tpu.core_type<tc>, window_params = [{transform_indices = @transform_0, window_bounds = array<i64: 1, 16, 128>}, {pipeline_mode = #tpu.pipeline_mode<synchronous>, transform_indices = @transform_1, window_bounds = array<i64: 640, 128>}, {pipeline_mode = #tpu.pipeline_mode<synchronous>, transform_indices = @transform_2, window_bounds = array<i64: 1, 128>}, {pipeline_mode = #tpu.pipeline_mode<synchronous>, transform_indices = @transform_3, window_bounds = array<i64: 640, 128>}, {pipeline_mode = #tpu.pipeline_mode<synchronous>, transform_indices = @transform_4, window_bounds = array<i64: 1, 128>}, {pipeline_mode = #tpu.pipeline_mode<synchronous>, transform_indices = @transform_5, window_bounds = array<i64: 640, 128>}, {pipeline_mode = #tpu.pipeline_mode<synchronous>, transform_indices = @transform_6, window_bounds = array<i64: 1, 128>}, {transform_indices = @transform_7, window_bounds = array<i64: 1, 2, 128>}]} {
    %c0 = arith.constant 0 : index
    %c0_0 = arith.constant 0 : index
    %c0_1 = arith.constant 0 : index
    %0 = vector.load %arg1[%c0, %c0_0, %c0_1] : memref<1x16x128xf32, #tpu.memory_space<vmem>>, vector<1x16x128xf32>
    %cst = arith.constant 0.000000e+00 : f32
    %1 = vector.broadcast %cst : f32 to vector<1x2x128xf32>
    %2 = tpu.concatenate %1, %0, %1 in 1 : vector<1x2x128xf32>, vector<1x16x128xf32>, vector<1x2x128xf32> -> vector<1x20x128xf32>
    %3 = vector.extract_strided_slice %2 {offsets = [0, 0, 0], sizes = [1, 16, 128], strides = [1, 1, 1]} : vector<1x20x128xf32> to vector<1x16x128xf32>
    %4 = vector.extract_strided_slice %2 {offsets = [0, 1, 0], sizes = [1, 16, 128], strides = [1, 1, 1]} : vector<1x20x128xf32> to vector<1x16x128xf32>
    %5 = vector.extract_strided_slice %2 {offsets = [0, 2, 0], sizes = [1, 16, 128], strides = [1, 1, 1]} : vector<1x20x128xf32> to vector<1x16x128xf32>
    %6 = vector.extract_strided_slice %2 {offsets = [0, 3, 0], sizes = [1, 16, 128], strides = [1, 1, 1]} : vector<1x20x128xf32> to vector<1x16x128xf32>
    %7 = vector.extract_strided_slice %2 {offsets = [0, 4, 0], sizes = [1, 16, 128], strides = [1, 1, 1]} : vector<1x20x128xf32> to vector<1x16x128xf32>
    %8 = tpu.concatenate %3, %4, %5, %6, %7 in 2 : vector<1x16x128xf32>, vector<1x16x128xf32>, vector<1x16x128xf32>, vector<1x16x128xf32>, vector<1x16x128xf32> -> vector<1x16x640xf32>
    %9 = vector.shape_cast %8 : vector<1x16x640xf32> to vector<16x640xf32>
    %c0_2 = arith.constant 0 : index
    %c0_3 = arith.constant 0 : index
    %10 = vector.load %arg2[%c0_2, %c0_3] : memref<640x128xf32, #tpu.memory_space<vmem>>, vector<640x128xf32>
    %cst_4 = arith.constant dense<0.000000e+00> : vector<16x128xf32>
    %11 = tpu.matmul %9, %10, %cst_4 {dimension_numbers = #tpu.dot_dimension_numbers<[1], [0], [0], [1], [0, 0, 1, 1], [], []>} : vector<16x640xf32>, vector<640x128xf32>, vector<16x128xf32> -> vector<16x128xf32>
    %12 = vector.shape_cast %11 : vector<16x128xf32> to vector<1x16x128xf32>
    %c0_5 = arith.constant 0 : index
    %c0_6 = arith.constant 0 : index
    %13 = vector.load %arg3[%c0_5, %c0_6] : memref<1x128xf32, #tpu.memory_space<vmem>>, vector<1x128xf32>
    %14 = vector.shape_cast %13 : vector<1x128xf32> to vector<1x1x128xf32>
    %15 = vector.broadcast %14 : vector<1x1x128xf32> to vector<1x16x128xf32>
    %16 = arith.addf %12, %15 : vector<1x16x128xf32>
    %cst_7 = arith.constant 0.000000e+00 : f32
    %17 = vector.broadcast %cst_7 : f32 to vector<1x16x128xf32>
    %18 = arith.maximumf %16, %17 : vector<1x16x128xf32>
    %19 = vector.shape_cast %18 : vector<1x16x128xf32> to vector<1x8x2x128xf32>
    %cst_8 = arith.constant dense<0xFF800000> : vector<1x8x128xf32>
    %20 = vector.multi_reduction <maximumf>, %19, %cst_8 [2] : vector<1x8x2x128xf32> to vector<1x8x128xf32>
    %cst_9 = arith.constant 0.000000e+00 : f32
    %21 = vector.broadcast %cst_9 : f32 to vector<1x2x128xf32>
    %22 = tpu.concatenate %21, %20, %21 in 1 : vector<1x2x128xf32>, vector<1x8x128xf32>, vector<1x2x128xf32> -> vector<1x12x128xf32>
    %23 = vector.extract_strided_slice %22 {offsets = [0, 0, 0], sizes = [1, 8, 128], strides = [1, 1, 1]} : vector<1x12x128xf32> to vector<1x8x128xf32>
    %24 = vector.extract_strided_slice %22 {offsets = [0, 1, 0], sizes = [1, 8, 128], strides = [1, 1, 1]} : vector<1x12x128xf32> to vector<1x8x128xf32>
    %25 = vector.extract_strided_slice %22 {offsets = [0, 2, 0], sizes = [1, 8, 128], strides = [1, 1, 1]} : vector<1x12x128xf32> to vector<1x8x128xf32>
    %26 = vector.extract_strided_slice %22 {offsets = [0, 3, 0], sizes = [1, 8, 128], strides = [1, 1, 1]} : vector<1x12x128xf32> to vector<1x8x128xf32>
    %27 = vector.extract_strided_slice %22 {offsets = [0, 4, 0], sizes = [1, 8, 128], strides = [1, 1, 1]} : vector<1x12x128xf32> to vector<1x8x128xf32>
    %28 = tpu.concatenate %23, %24, %25, %26, %27 in 2 : vector<1x8x128xf32>, vector<1x8x128xf32>, vector<1x8x128xf32>, vector<1x8x128xf32>, vector<1x8x128xf32> -> vector<1x8x640xf32>
    %29 = vector.shape_cast %28 : vector<1x8x640xf32> to vector<8x640xf32>
    %c0_10 = arith.constant 0 : index
    %c0_11 = arith.constant 0 : index
    %30 = vector.load %arg4[%c0_10, %c0_11] : memref<640x128xf32, #tpu.memory_space<vmem>>, vector<640x128xf32>
    %cst_12 = arith.constant dense<0.000000e+00> : vector<8x128xf32>
    %31 = tpu.matmul %29, %30, %cst_12 {dimension_numbers = #tpu.dot_dimension_numbers<[1], [0], [0], [1], [0, 0, 1, 1], [], []>} : vector<8x640xf32>, vector<640x128xf32>, vector<8x128xf32> -> vector<8x128xf32>
    %32 = vector.shape_cast %31 : vector<8x128xf32> to vector<1x8x128xf32>
    %c0_13 = arith.constant 0 : index
    %c0_14 = arith.constant 0 : index
    %33 = vector.load %arg5[%c0_13, %c0_14] : memref<1x128xf32, #tpu.memory_space<vmem>>, vector<1x128xf32>
    %34 = vector.shape_cast %33 : vector<1x128xf32> to vector<1x1x128xf32>
    %35 = vector.broadcast %34 : vector<1x1x128xf32> to vector<1x8x128xf32>
    %36 = arith.addf %32, %35 : vector<1x8x128xf32>
    %cst_15 = arith.constant 0.000000e+00 : f32
    %37 = vector.broadcast %cst_15 : f32 to vector<1x8x128xf32>
    %38 = arith.maximumf %36, %37 : vector<1x8x128xf32>
    %39 = vector.shape_cast %38 : vector<1x8x128xf32> to vector<1x4x2x128xf32>
    %cst_16 = arith.constant dense<0xFF800000> : vector<1x4x128xf32>
    %40 = vector.multi_reduction <maximumf>, %39, %cst_16 [2] : vector<1x4x2x128xf32> to vector<1x4x128xf32>
    %cst_17 = arith.constant 0.000000e+00 : f32
    %41 = vector.broadcast %cst_17 : f32 to vector<1x2x128xf32>
    %42 = tpu.concatenate %41, %40, %41 in 1 : vector<1x2x128xf32>, vector<1x4x128xf32>, vector<1x2x128xf32> -> vector<1x8x128xf32>
    %43 = vector.extract_strided_slice %42 {offsets = [0, 0, 0], sizes = [1, 4, 128], strides = [1, 1, 1]} : vector<1x8x128xf32> to vector<1x4x128xf32>
    %44 = vector.extract_strided_slice %42 {offsets = [0, 1, 0], sizes = [1, 4, 128], strides = [1, 1, 1]} : vector<1x8x128xf32> to vector<1x4x128xf32>
    %45 = vector.extract_strided_slice %42 {offsets = [0, 2, 0], sizes = [1, 4, 128], strides = [1, 1, 1]} : vector<1x8x128xf32> to vector<1x4x128xf32>
    %46 = vector.extract_strided_slice %42 {offsets = [0, 3, 0], sizes = [1, 4, 128], strides = [1, 1, 1]} : vector<1x8x128xf32> to vector<1x4x128xf32>
    %47 = vector.extract_strided_slice %42 {offsets = [0, 4, 0], sizes = [1, 4, 128], strides = [1, 1, 1]} : vector<1x8x128xf32> to vector<1x4x128xf32>
    %48 = tpu.concatenate %43, %44, %45, %46, %47 in 2 : vector<1x4x128xf32>, vector<1x4x128xf32>, vector<1x4x128xf32>, vector<1x4x128xf32>, vector<1x4x128xf32> -> vector<1x4x640xf32>
    %49 = vector.shape_cast %48 : vector<1x4x640xf32> to vector<4x640xf32>
    %c0_18 = arith.constant 0 : index
    %c0_19 = arith.constant 0 : index
    %50 = vector.load %arg6[%c0_18, %c0_19] : memref<640x128xf32, #tpu.memory_space<vmem>>, vector<640x128xf32>
    %cst_20 = arith.constant dense<0.000000e+00> : vector<4x128xf32>
    %51 = tpu.matmul %49, %50, %cst_20 {dimension_numbers = #tpu.dot_dimension_numbers<[1], [0], [0], [1], [0, 0, 1, 1], [], []>} : vector<4x640xf32>, vector<640x128xf32>, vector<4x128xf32> -> vector<4x128xf32>
    %52 = vector.shape_cast %51 : vector<4x128xf32> to vector<1x4x128xf32>
    %c0_21 = arith.constant 0 : index
    %c0_22 = arith.constant 0 : index
    %53 = vector.load %arg7[%c0_21, %c0_22] : memref<1x128xf32, #tpu.memory_space<vmem>>, vector<1x128xf32>
    %54 = vector.shape_cast %53 : vector<1x128xf32> to vector<1x1x128xf32>
    %55 = vector.broadcast %54 : vector<1x1x128xf32> to vector<1x4x128xf32>
    %56 = arith.addf %52, %55 : vector<1x4x128xf32>
    %cst_23 = arith.constant 0.000000e+00 : f32
    %57 = vector.broadcast %cst_23 : f32 to vector<1x4x128xf32>
    %58 = arith.maximumf %56, %57 : vector<1x4x128xf32>
    %59 = vector.shape_cast %58 : vector<1x4x128xf32> to vector<1x2x2x128xf32>
    %cst_24 = arith.constant dense<0xFF800000> : vector<1x2x128xf32>
    %60 = vector.multi_reduction <maximumf>, %59, %cst_24 [2] : vector<1x2x2x128xf32> to vector<1x2x128xf32>
    %c0_25 = arith.constant 0 : index
    %c0_26 = arith.constant 0 : index
    %c0_27 = arith.constant 0 : index
    %61 = vector.load %arg8[%c0_25, %c0_26, %c0_27] : memref<1x2x128xf32, #tpu.memory_space<vmem>>, vector<1x2x128xf32>
    tpu.vector_store %arg8[%c0_25, %c0_26, %c0_27], %60 {strides = array<i32>} : memref<1x2x128xf32, #tpu.memory_space<vmem>>, vector<1x2x128xf32>,
    return
  }
  func.func @transform_0(%arg0: i32) -> (i32, i32, i32) {
    %c0_i32 = arith.constant 0 : i32
    %c0_i32_0 = arith.constant 0 : i32
    %c0_i32_1 = arith.constant 0 : i32
    return %arg0, %c0_i32, %c0_i32_0 : i32, i32, i32
  }
  func.func @transform_1(%arg0: i32) -> (i32, i32) {
    %c0_i32 = arith.constant 0 : i32
    %c0_i32_0 = arith.constant 0 : i32
    %c0_i32_1 = arith.constant 0 : i32
    return %c0_i32, %c0_i32_0 : i32, i32
  }
  func.func @transform_2(%arg0: i32) -> (i32, i32) {
    %c0_i32 = arith.constant 0 : i32
    %c0_i32_0 = arith.constant 0 : i32
    %c0_i32_1 = arith.constant 0 : i32
    return %c0_i32, %c0_i32_0 : i32, i32
  }
  func.func @transform_3(%arg0: i32) -> (i32, i32) {
    %c0_i32 = arith.constant 0 : i32
    %c0_i32_0 = arith.constant 0 : i32
    %c0_i32_1 = arith.constant 0 : i32
    return %c0_i32, %c0_i32_0 : i32, i32
  }
  func.func @transform_4(%arg0: i32) -> (i32, i32) {
    %c0_i32 = arith.constant 0 : i32
    %c0_i32_0 = arith.constant 0 : i32
    %c0_i32_1 = arith.constant 0 : i32
    return %c0_i32, %c0_i32_0 : i32, i32
  }
  func.func @transform_5(%arg0: i32) -> (i32, i32) {
    %c0_i32 = arith.constant 0 : i32
    %c0_i32_0 = arith.constant 0 : i32
    %c0_i32_1 = arith.constant 0 : i32
    return %c0_i32, %c0_i32_0 : i32, i32
  }
  func.func @transform_6(%arg0: i32) -> (i32, i32) {
    %c0_i32 = arith.constant 0 : i32
    %c0_i32_0 = arith.constant 0 : i32
    %c0_i32_1 = arith.constant 0 : i32
    return %c0_i32, %c0_i32_0 : i32, i32
  }
  func.func @transform_7(%arg0: i32) -> (i32, i32, i32) {
    %c0_i32 = arith.constant 0 : i32
    %c0_i32_0 = arith.constant 0 : i32
    %c0_i32_1 = arith.constant 0 : i32
    return %arg0, %c0_i32, %c0_i32_0 : i32, i32, i32
  }
}

</mosaic_0001>

<bundles_post_ra>
// kernel: tpu_custom_call.1
= control target key start
LH: loop header
LB: loop body
LE: loop exit
PB: predicated region body
PF: predicated region fallthrough
CT: control target
= control target key end

     0   :  { %12 = vsyncpa [#allocation3], 0  ;;  %s3029_s0 = inlined_call_operand.hbm [shape: f32[2,16,128], index: 0, kind: input, shape index: {}]   ;;  %s3030_s1 = inlined_call_operand.hbm [shape: f32[640,128], index: 1, kind: input, shape index: {}]   ;;  %s3031_s2 = inlined_call_operand.vmem [shape: f32[1,128], index: 2, kind: input, shape index: {}]   ;;  %s3032_s3 = inlined_call_operand.hbm [shape: f32[640,128], index: 3, kind: input, shape index: {}]   ;;  %s3033_s4 = inlined_call_operand.vmem [shape: f32[1,128], index: 4, kind: input, shape index: {}]   ;;  %s3034_s5 = inlined_call_operand.hbm [shape: f32[640,128], index: 5, kind: input, shape index: {}]   ;;  %s3035_s6 = inlined_call_operand.vmem [shape: f32[1,128], index: 6, kind: input, shape index: {}]   ;;  %s3036_s7 = inlined_call_operand.hbm [shape: f32[2,2,128], index: 7, kind: output, shape index: {}]  }
   0x1   :  { %14 = vsyncpa [#allocation3 + $0x1], 0 }
   0x2   :  { %15 = vsyncpa [#allocation6], 0 }
   0x3   :  { %16 = vsyncpa [#allocation9], 0 }
   0x4   :  { %17 = vsyncpa [#allocation4], 0 }
   0x5   :  { %19 = vsyncpa [#allocation4 + $0x1], 0  ;;  %s2653_s24 = smov 0   ;;  %s2655_s25 = smov 0  }
   0x6   :  { %s2657_s26 = smov 0   ;;  %s2659_s27 = smov 0  }
   0x7 LB: > { %s2674_s28 = sadd.s32 4294967295, %s2600_s27   ;;  %s1656_s29 = sadd.s32 4294967294, %s2600_s27   ;;  %s2600_s27 = sphi %s2659_s27, %s3064_s27   ;;  %s2596_s26 = sphi %s2657_s26, %s3063_s26   ;;  %s2592_s25 = sphi %s2655_s25, %s3062_s25   ;;  %s2588_s24 = sphi %s2653_s24, %s3061_s24  }
   0x8   : > { %p45_p0 = scmp.ne.s32.totalorder %s2592_s25, %s2588_s24  ;;  %p3037_p1 = scmp.eq.s32.totalorder %s2674_s28, 0 }
   0x9   : > { %p201_p3 = scmp.eq.s32.totalorder %s1656_s29, 1  ;;  %p1657_p5 = scmp.ge.s32.totalorder %s2600_s27, 1 }
   0xa   : > { %p2683_p4 = por %p3037_p1, %p45_p0  ;;  %p208_p7 = scmp.lt.s32.totalorder %s2600_s27, 3 }
   0xb   : > { %p2688_p6 = por %p201_p3, %p45_p0  ;;  %s2602_s10 = smov [#allocation5]  }
   0xc   : > { %s3041_s30 = scalar_select %p2683_p4, 1, 0 }
   0xd   : > { %s3042_s8 = scalar_select %p2688_p6, 1, 0 }
   0xe   : > { %p2693_p8 = pnand %p1657_p5, %p208_p7  ;;  %s220_s11 = sshll.u32 %s2602_s10, 4  ;;  %s2697_s11 = int_to_ptr.vmem [resolvable:$true] %s220_s11 }
   0xf   : > { %3043 = sst [smem:[#allocation15_spill]] %s3042_s8  ;;  %s2603_s13 = smov [#allocation7]  }
  0x10   : > { %s3044_s9 = scalar_select %p2693_p8, 1, 0 }
  0x11   : > { %p2345_p9 = pneg %p2693_p8  ;;  %s236_s14 = sshll.u32 %s2603_s13, 4  ;;  %s2708_s14 = int_to_ptr.vmem [resolvable:$true] %s236_s14 }
  0x12   : > { %s2604_s15 = smov [#allocation8]   ;;  %s2412_s19 = scalar_lea.hbm %s3030_s1, 10240 }
  0x13   : > { %p2704_p11 = pnand %p2345_p9, %p3037_p1  ;;  %s2710_s16 = sshll.u32 %s2604_s15, 4  ;;  %s253_s16 = int_to_ptr.vmem [resolvable:$true] %s2710_s16 }
  0x14   : > { %p2413_p12 = scmp.ne.s32.totalorder %s3030_s1, %s2412_s19  ;;  %p2419_p5 = scmp.lt.u32.totalorder %s2412_s19, %s3030_s1 }
  0x15   : > { %p2720_p13 = pneg %p2704_p11 }
  0x17   : > { %p2415_p0 = pnand %p2720_p13, %p2413_p12 }
  0x19   : > { %p2416_p3 = pneg %p2415_p0 }
  0x1b   : > { %p2421_p7 = pnand %p2419_p5, %p2416_p3 }
  0x1d   : > { %2424 = shalt.err (!%p2421_p7)
}
  0x1e   : > { %s2425_s10 = scalar_lea.vmem %s2697_s11, 10240  ;;  %p2433_p2 = scmp.lt.s32.totalorder %s2697_s11, %s2697_s11 }
  0x1f   : > { %p2426_p9 = scmp.ne.s32.totalorder %s2697_s11, %s2425_s10  ;;  %p2434_p6 = scmp.lt.s32.totalorder %s2425_s10, %s2425_s10 }
  0x21   : > { %p2428_p10 = pnand %p2426_p9, %p2720_p13  ;;  %p2435_p12 = por %p2434_p6, %p2433_p2 }
  0x23   : > { %p2429_p1 = pneg %p2428_p10 }
  0x25   : > { %p2436_p0 = pnand %p2435_p12, %p2429_p1 }
  0x27   : > { %2439 = shalt.err (!%p2436_p0)
}
  0x28   : > { %s2605_s13 = smov 128   ;;  %s2606_s15 = smov 8  }
  0x29   : > { %2348 = dma.hbm_to_vmem [thread:$0]  (!%p2704_p11), %s3030_s1, 10240, %s2697_s11, [#allocation6], %s2605_s13, %s2605_s13, %s2606_s15  }
  0x2a   : > { %s2440_s21 = scalar_lea.hbm %s3032_s3, 10240 }
  0x2b   : > { %p2441_p1 = scmp.ne.s32.totalorder %s3032_s3, %s2440_s21  ;;  %p2447_p10 = scmp.lt.u32.totalorder %s2440_s21, %s3032_s3 }
  0x2d   : > { %p2443_p2 = pnand %p2441_p1, %p2720_p13 }
  0x2f   : > { %p2444_p6 = pneg %p2443_p2 }
  0x31   : > { %p2449_p3 = pnand %p2447_p10, %p2444_p6 }
  0x33   : > { %2452 = shalt.err (!%p2449_p3)
}
  0x34   : > { %s2453_s11 = scalar_lea.vmem %s2708_s14, 10240  ;;  %p2461_p12 = scmp.lt.s32.totalorder %s2708_s14, %s2708_s14 }
  0x35   : > { %p2454_p5 = scmp.ne.s32.totalorder %s2708_s14, %s2453_s11  ;;  %p2462_p0 = scmp.lt.s32.totalorder %s2453_s11, %s2453_s11 }
  0x37   : > { %p2456_p7 = pnand %p2454_p5, %p2720_p13  ;;  %p2463_p1 = por %p2462_p0, %p2461_p12 }
  0x39   : > { %p2457_p9 = pneg %p2456_p7 }
  0x3b   : > { %p2464_p2 = pnand %p2463_p1, %p2457_p9 }
  0x3d   : > { %2467 = shalt.err (!%p2464_p2)
}
  0x3e   : > { %2351 = dma.hbm_to_vmem [thread:$0]  (!%p2704_p11), %s3032_s3, 10240, %s2708_s14, [#allocation6], %s2605_s13, %s2605_s13, %s2606_s15  }
  0x3f   : > { %s2468_s20 = scalar_lea.hbm %s3034_s5, 10240 }
  0x40   : > { %p2469_p6 = scmp.ne.s32.totalorder %s3034_s5, %s2468_s20  ;;  %p2475_p5 = scmp.lt.u32.totalorder %s2468_s20, %s3034_s5 }
  0x42   : > { %p2471_p10 = pnand %p2469_p6, %p2720_p13 }
  0x44   : > { %p2472_p3 = pneg %p2471_p10 }
  0x46   : > { %p2477_p7 = pnand %p2475_p5, %p2472_p3 }
  0x48   : > { %2480 = shalt.err (!%p2477_p7)
}
  0x49   : > { %s2481_s11 = scalar_lea.vmem %s253_s16, 10240  ;;  %p2489_p1 = scmp.lt.s32.totalorder %s253_s16, %s253_s16 }
  0x4a   : > { %p2482_p9 = scmp.ne.s32.totalorder %s253_s16, %s2481_s11  ;;  %p2490_p2 = scmp.lt.s32.totalorder %s2481_s11, %s2481_s11 }
  0x4c   : > { %p2484_p12 = pnand %p2482_p9, %p2720_p13  ;;  %p2491_p4 = por %p2490_p2, %p2489_p1 }
  0x4e   : > { %p2485_p0 = pneg %p2484_p12 }
  0x50   : > { %p2492_p8 = pnand %p2491_p4, %p2485_p0 }
  0x52   : > { %2495 = shalt.err (!%p2492_p8)
}
  0x53   : > { %2354 = dma.hbm_to_vmem [thread:$0]  (!%p2704_p11), %s3034_s5, 10240, %s253_s16, [#allocation9], %s2605_s13, %s2605_s13, %s2606_s15  }
  0x54   : > { %s2793_s22 = sadd.s32 1, %s2600_s27   ;;  %s32_s17 = sadd.s32 1, %s2596_s26 }
  0x55   : > { %s29_s12 = ssub.s32 %s2600_s27, %s2793_s22  ;;  %p39_p8 = scmp.ne.s32.totalorder %s2596_s26, %s2592_s25 }
  0x56   : > { %p30_p4 = scmp.eq.s32.totalorder %s29_s12, 0  ;;  %p40_p13 = scmp.eq.s32.totalorder %s2600_s27, 0 }
  0x57   : > { %p2366_p6 = scmp.lt.s32.totalorder %s2600_s27, 2  ;;  %p3047_p3 = scmp.eq.s32.totalorder %s2674_s28, 1 }
  0x58   : > { %s2803_s18 = scalar_select %p30_p4, %s2596_s26, %s32_s17  }
  0x59   : > { %p41_p10 = por %p40_p13, %p39_p8  ;;  %p2807_p5 = por %p3047_p3, %p39_p8 }
  0x5a   : > { %s269_s20 = sand.u32 1, %s2596_s26   ;;  %s1683_s21 = sshll.u32 %s2600_s27, 8 }
  0x5b   : > { %s1662_s16 = sshll.u32 %s269_s20, 4  ;;  %s2816_s10 = scalar_lea.hbm %s3029_s0, %s1683_s21 }
  0x5c   : > { %s273_s11 = scalar_lea.vmem [#allocation2], %s1662_s16  ;;  %p2818_p11 = pnand %p2366_p6, %p41_p10 }
  0x5d   : > { %s280_s14 = sshll.u32 %s273_s11, 4  ;;  %s2824_s12 = scalar_lea.sflag [#allocation3], %s269_s20  ;;  %s2822_s14 = int_to_ptr.vmem [resolvable:$true] %s280_s14 }
  0x5e   : > { %s2496_s17 = scalar_lea.hbm %s2816_s10, 256  ;;  %p2498_p9 = pneg %p2818_p11 }
  0x5f   : > { %p2497_p7 = scmp.ne.s32.totalorder %s2816_s10, %s2496_s17  ;;  %s2501_s23 = scalar_lea.hbm %s3029_s0, 512 }
  0x60   : > { %p2502_p1 = scmp.lt.u32.totalorder %s2816_s10, %s3029_s0  ;;  %p2503_p2 = scmp.lt.u32.totalorder %s2501_s23, %s2496_s17 }
  0x61   : > { %p2499_p12 = pnand %p2498_p9, %p2497_p7  ;;  %p2505_p8 = scmp.lt.u32.totalorder %s2496_s17, %s2816_s10 }
  0x62   : > { %p2504_p4 = por %p2503_p2, %p2502_p1 }
  0x63   : > { %p2500_p0 = pneg %p2499_p12 }
  0x64   : > { %p2506_p13 = por %p2505_p8, %p2504_p4 }
  0x66   : > { %p2507_p6 = pnand %p2506_p13, %p2500_p0 }
  0x68   : > { %2510 = shalt.err (!%p2507_p6)
}
  0x69   : > { %s2511_s20 = scalar_lea.vmem %s2822_s14, 256  ;;  %s2607_s21 = smov [#allocation2]  }
  0x6a   : > { %p2512_p10 = scmp.ne.s32.totalorder %s2822_s14, %s2511_s20  ;;  %s2516_s16 = sshll.u32 %s2607_s21, 4  ;;  %s2517_s16 = int_to_ptr.vmem [resolvable:$false] %s2516_s16 }
  0x6b   : > { %s2518_s29 = scalar_lea.vmem %s2517_s16, 512  ;;  %p2519_p12 = scmp.lt.s32.totalorder %s2822_s14, %s2517_s16 }
  0x6c   : > { %p2514_p3 = pnand %p2512_p10, %p2498_p9  ;;  %p2520_p1 = scmp.lt.s32.totalorder %s2518_s29, %s2511_s20 }
  0x6e   : > { %p2515_p7 = pneg %p2514_p3  ;;  %p2521_p2 = por %p2520_p1, %p2519_p12 }
  0x70   : > { %p2522_p4 = pnand %p2521_p2, %p2515_p7 }
  0x72   : > { %2525 = shalt.err (!%p2522_p4)
}
  0x73   : > { %2358 = dma.hbm_to_vmem [thread:$0]  (!%p2818_p11), %s2816_s10, 256, %s2822_s14, %s2824_s12, %s2605_s13, %s2605_s13, %s2606_s15  }
  0x74   : > { %p3050_p9 = scmp.ne.s32.totalorder %s3044_s9, 0 }
  0x75   : > { %s2858_s17 = sand.u32 (!%p3050_p9), 1, %s2592_s25   ;;  %p3051_p0 = scmp.ne.s32.totalorder (!%p3050_p9), %s3041_s30, 0 }
  0x76   : > { %292 = sbr.rel (%p3050_p9) target bundleno = 1006 (0x3ee), region = 48  ;;  %s1666_s23 = sshll.u32 (!%p3050_p9), %s2858_s17, 4 }
  0x77   : > { %s295_s11 = scalar_lea.sflag (!%p3050_p9), [#allocation3], %s2858_s17  ;;  %s2862_s20 = scalar_lea.vmem (!%p3050_p9), [#allocation2], %s1666_s23 }
  0x7d   : > { %2571 = dma.done.wait (%p3051_p0), %s295_s11, 256  }
  0x7e   : > { %2573 = vsyncadd (%p3051_p0), %s295_s11, 4294967040  ;;  %p3052_p11 = scmp.eq.s32.totalorder %s2674_s28, 0 }
  0x80   : > { %2575 = dma.done.wait (%p3052_p11), [#allocation6], 20480   ;;  %p3053_p8 = pmov %p3052_p11 }
  0x82   : > { %2577 = vsyncadd (%p3053_p8), [#allocation6], 4294946816  ;;  %p3054_p13 = pmov %p3053_p8 }
  0x83   : > { %p3055_p6 = pmov %p3053_p8 }
  0x84   : > { %2579 = dma.done.wait (%p3054_p13), [#allocation9], 10240  }
  0x85   : > { %2581 = vsyncadd (%p3055_p6), [#allocation9], 4294957056  ;;  %v404_v0 = vld [vmem:[#allocation5 + $0x80] sm:$0xff]  ;;  %v405_v1 = vld [vmem:[#allocation5 + $0x88] sm:$0xff]  ;;  %vm345_vm0 = vcmask 1041408   ;;  %vm356_vm1 = vcmask 1046528  }
  0x86   : > { %v436_v2 = vld [vmem:[#allocation5 + $0x180] sm:$0xff]  ;;  %v2057_v3 = vpack.c.bf16 %v405_v1, %v404_v0  ;;  %v437_v4 = vld [vmem:[#allocation5 + $0x188] sm:$0xff]  ;;  %v406_v11 = vld [vmem:[#allocation5 + $0x90] sm:$0xff]  ;;  %vm372_vm2 = vcmask 1044480   ;;  %vm364_vm3 = vcmask 1045504   ;;  %vm380_vm5 = vcmask 1043456  }
  0x87   : > { %v388_v5 = vld [vmem:[#allocation5] sm:$0xff]  ;;  %v389_v6 = vld [vmem:[#allocation5 + $0x8] sm:$0xff]  ;;  %v2089_v7 = vpack.c.bf16 %v437_v4, %v436_v2  ;;  %v407_v13 = vld [vmem:[#allocation5 + $0x98] sm:$0xff]  ;;  %vm812_vm6 = vcmask 1043459   ;;  %vm814_vm7 = vcmask 1044484   ;;  %vm822_vm8 = vcmask 1041409  }
  0x88   : > { %v2059_v8 = vpack.c.bf16 %v389_v6, %v388_v5  ;;  %v420_v9 = vld [vmem:[#allocation5 + $0x100] sm:$0xff]  ;;  %v421_v10 = vld [vmem:[#allocation5 + $0x108] sm:$0xff]  ;;  %2058 = vmatprep.subr.bf16.mxu0 %v2057_v3  ;;  %v438_v14 = vld [vmem:[#allocation5 + $0x190] sm:$0xff]  ;;  %v2061_v16 = vpack.c.bf16 %v407_v13, %v406_v11  ;;  %vm816_vm9 = vcmask 1045509   ;;  %vm818_vm10 = vcmask 1046534   ;;  %s1670_s8 = sshll.u32 %s2858_s17, 1 }
  0x89   : > { %v2091_v12 = vpack.c.bf16 %v421_v10, %v420_v9  ;;  %v439_v15 = vld [vmem:[#allocation5 + $0x198] sm:$0xff]  ;;  %2090 = vmatprep.subr.bf16.mxu1 %v2089_v7  ;;  %v390_v18 = vld [vmem:[#allocation5 + $0x10] sm:$0xff]  ;;  %v408_v23 = vld [vmem:[#allocation5 + $0xa0] sm:$0xff]  ;;  %vm820_vm11 = vcmask 1047559   ;;  %vm2610_vm12 = vmmov 0   ;;  %s1680_s12 = sshll.u32 %s2674_s28, 5 }
  0x8a   : > { %2060 = vmatpush3.bf16.msra.mxu0 %v2059_v8  ;;  %v2093_v17 = vpack.c.bf16 %v439_v15, %v438_v14  ;;  %v391_v19 = vld [vmem:[#allocation5 + $0x18] sm:$0xff]  ;;  %v422_v20 = vld [vmem:[#allocation5 + $0x110] sm:$0xff]  ;;  %v409_v24 = vld [vmem:[#allocation5 + $0xa8] sm:$0xff]  ;;  %s340_s21 = scalar_lea.vmem [#allocation10], %s1670_s8  ;;  %s2984_s11 = scalar_lea.hbm %s3036_s7, %s1680_s12 }
  0x8b   : > { %2092 = vmatpush3.bf16.msra.mxu1 %v2091_v12  ;;  %v2063_v21 = vpack.c.bf16 %v391_v19, %v390_v18  ;;  %v423_v22 = vld [vmem:[#allocation5 + $0x118] sm:$0xff]  ;;  %2062 = vmatprep.subr.bf16.mxu0 %v2061_v16  ;;  %v2065_v26 = vpack.c.bf16 %v409_v24, %v408_v23  ;;  %v440_v27 = vld [vmem:[#allocation5 + $0x1a0] sm:$0xff]  ;;  %v441_v28 = vld [vmem:[#allocation5 + $0x1a8] sm:$0xff]  ;;  %s1557_s16 = sshll.u32 %s340_s21, 4  ;;  %s2612_s28 = smov [#allocation10]   ;;  %s2986_s16 = int_to_ptr.vmem [resolvable:$true] %s1557_s16 }
  0x8c   : > { %2094 = vmatprep.subr.bf16.mxu1 %v2093_v17  ;;  %v2095_v25 = vpack.c.bf16 %v423_v22, %v422_v20  ;;  %v392_v29 = vld [vmem:[#allocation5 + $0x20] sm:$0xff]  ;;  %v2097_v30 = vpack.c.bf16 %v441_v28, %v440_v27  ;;  %v393_v31 = vld [vmem:[#allocation5 + $0x28] sm:$0xff]  ;;  %v410_v35 = vld [vmem:[#allocation5 + $0xb0] sm:$0xff]  ;;  %s2526_s30 = scalar_lea.vmem %s2986_s16, 32  ;;  %s2530_s9 = sshll.u32 %s2612_s28, 4  ;;  %s2531_s9 = int_to_ptr.vmem [resolvable:$false] %s2530_s9 }
  0x8d   : > { %v424_v32 = vld [vmem:[#allocation5 + $0x120] sm:$0xff]  ;;  %v425_v33 = vld [vmem:[#allocation5 + $0x128] sm:$0xff]  ;;  %v2067_v34 = vpack.c.bf16 %v393_v31, %v392_v29  ;;  %v411_v36 = vld [vmem:[#allocation5 + $0xb8] sm:$0xff]  ;;  %p2527_p10 = scmp.ne.s32.totalorder %s2986_s16, %s2526_s30  ;;  %s2532_s13 = scalar_lea.vmem %s2531_s9, 64 }
  0x8e   : > { %2064 = vmatpush3.bf16.msra.mxu0 %v2063_v21  ;;  %v442_v37 = vld [vmem:[#allocation5 + $0x1b0] sm:$0xff]  ;;  %v2099_v38 = vpack.c.bf16 %v425_v33, %v424_v32  ;;  %v2069_v39 = vpack.c.bf16 %v411_v36, %v410_v35  ;;  %v443_v40 = vld [vmem:[#allocation5 + $0x1b8] sm:$0xff]  ;;  %v412_v46 = vld [vmem:[#allocation5 + $0xc0] sm:$0xff]  ;;  %p2533_p12 = scmp.lt.s32.totalorder %s2986_s16, %s2531_s9  ;;  %p2534_p1 = scmp.lt.s32.totalorder %s2532_s13, %s2526_s30 }
  0x8f   : > { %2096 = vmatpush3.bf16.msra.mxu1 %v2095_v25  ;;  %2066 = vmatprep.subr.bf16.mxu0 %v2065_v26  ;;  %v394_v41 = vld [vmem:[#allocation5 + $0x30] sm:$0xff]  ;;  %v395_v42 = vld [vmem:[#allocation5 + $0x38] sm:$0xff]  ;;  %v2101_v43 = vpack.c.bf16 %v443_v40, %v442_v37  ;;  %v413_v47 = vld [vmem:[#allocation5 + $0xc8] sm:$0xff]  ;;  %p2528_p3 = pnand %p2527_p10, %p2807_p5 }
  0x90   : > { %2098 = vmatprep.subr.bf16.mxu1 %v2097_v30  ;;  %v426_v44 = vld [vmem:[#allocation5 + $0x130] sm:$0xff]  ;;  %v427_v45 = vld [vmem:[#allocation5 + $0x138] sm:$0xff]  ;;  %v444_v48 = vld [vmem:[#allocation5 + $0x1c0] sm:$0xff]  ;;  %v2071_v50 = vpack.c.bf16 %v395_v42, %v394_v41  ;;  %v2073_v52 = vpack.c.bf16 %v413_v47, %v412_v46  ;;  %p2535_p2 = por %p2534_p1, %p2533_p12 }
  0x91   : > { %v445_v49 = vld [vmem:[#allocation5 + $0x1c8] sm:$0xff]  ;;  %v2103_v51 = vpack.c.bf16 %v427_v45, %v426_v44  ;;  %v396_v53 = vld [vmem:[#allocation5 + $0x40] sm:$0xff]  ;;  %v414_v58 = vld [vmem:[#allocation5 + $0xd0] sm:$0xff]  ;;  %p2529_p7 = pneg %p2528_p3 }
  0x92   : > { %2068 = vmatpush3.bf16.msra.mxu0 %v2067_v34  ;;  %v397_v54 = vld [vmem:[#allocation5 + $0x48] sm:$0xff]  ;;  %v428_v55 = vld [vmem:[#allocation5 + $0x140] sm:$0xff]  ;;  %v2105_v56 = vpack.c.bf16 %v445_v49, %v444_v48  ;;  %v415_v59 = vld [vmem:[#allocation5 + $0xd8] sm:$0xff] }
  0x93   : > { %2100 = vmatpush3.bf16.msra.mxu1 %v2099_v38  ;;  %2070 = vmatprep.subr.bf16.mxu0 %v2069_v39  ;;  %v429_v57 = vld [vmem:[#allocation5 + $0x148] sm:$0xff]  ;;  %v446_v60 = vld [vmem:[#allocation5 + $0x1d0] sm:$0xff]  ;;  %v447_v61 = vld [vmem:[#allocation5 + $0x1d8] sm:$0xff]  ;;  %v2075_v62 = vpack.c.bf16 %v397_v54, %v396_v53  ;;  %v2077_v1 = vpack.c.bf16 %v415_v59, %v414_v58  ;;  %p2536_p4 = pnand %p2535_p2, %p2529_p7 }
  0x94   : > { %2102 = vmatprep.subr.bf16.mxu1 %v2101_v43  ;;  %v398_v63 = vld [vmem:[#allocation5 + $0x50] sm:$0xff]  ;;  %v2107_v0 = vpack.c.bf16 %v429_v57, %v428_v55  ;;  %v399_v2 = vld [vmem:[#allocation5 + $0x58] sm:$0xff]  ;;  %v2109_v5 = vpack.c.bf16 %v447_v61, %v446_v60  ;;  %v416_v6 = vld [vmem:[#allocation5 + $0xe0] sm:$0xff] }
  0x95   : > { %v430_v3 = vld [vmem:[#allocation5 + $0x150] sm:$0xff]  ;;  %v431_v4 = vld [vmem:[#allocation5 + $0x158] sm:$0xff]  ;;  %v417_v7 = vld [vmem:[#allocation5 + $0xe8] sm:$0xff]  ;;  %v2079_v12 = vpack.c.bf16 %v399_v2, %v398_v63 }
  0x96   : > { %2072 = vmatpush3.bf16.msra.mxu0 %v2071_v50  ;;  %v448_v8 = vld [vmem:[#allocation5 + $0x1e0] sm:$0xff]  ;;  %v449_v9 = vld [vmem:[#allocation5 + $0x1e8] sm:$0xff]  ;;  %v418_v15 = vld [vmem:[#allocation5 + $0xf0] sm:$0xff]  ;;  %v2111_v16 = vpack.c.bf16 %v431_v4, %v430_v3  ;;  %v2081_v17 = vpack.c.bf16 %v417_v7, %v416_v6 }
  0x97   : > { %2104 = vmatpush3.bf16.msra.mxu1 %v2103_v51  ;;  %2074 = vmatprep.subr.bf16.mxu0 %v2073_v52  ;;  %v400_v10 = vld [vmem:[#allocation5 + $0x60] sm:$0xff]  ;;  %v401_v11 = vld [vmem:[#allocation5 + $0x68] sm:$0xff]  ;;  %v419_v18 = vld [vmem:[#allocation5 + $0xf8] sm:$0xff]  ;;  %v2113_v21 = vpack.c.bf16 %v449_v9, %v448_v8 }
  0x98   : > { %2106 = vmatprep.subr.bf16.mxu1 %v2105_v56  ;;  %v432_v13 = vld [vmem:[#allocation5 + $0x160] sm:$0xff]  ;;  %v433_v14 = vld [vmem:[#allocation5 + $0x168] sm:$0xff]  ;;  %v2083_v24 = vpack.c.bf16 %v401_v11, %v400_v10  ;;  %v450_v25 = vld [vmem:[#allocation5 + $0x1f0] sm:$0xff]  ;;  %v2085_v28 = vpack.c.bf16 %v419_v18, %v418_v15 }
  0x99   : > { %v341_v19 = vld [vmem:[%s2862_s20] sm:$0xff]  ;;  %v342_v20 = vld [vmem:[%s2862_s20 + $0x8] sm:$0xff]  ;;  %v2115_v27 = vpack.c.bf16 %v433_v14, %v432_v13  ;;  %vm2893_vm4 = vmneg %vm345_vm0  ;;  %s1544_s20 = scalar_lea.sflag [#allocation4], %s2858_s17 }
  0x9a   : > { %2076 = vmatpush3.bf16.msra.mxu0 %v2075_v62  ;;  %v346_v22 = vrot.slane %v341_v19, 6  ;;  %v347_v23 = vrot.slane %v342_v20, 6  ;;  %v451_v26 = vld [vmem:[#allocation5 + $0x1f8] sm:$0xff]  ;;  %v402_v29 = vld [vmem:[#allocation5 + $0x70] sm:$0xff]  ;;  %v452_v40 = vld [vmem:[#allocation5 + $0x200] sm:$0xff] }
  0x9b   : > { %2108 = vmatpush3.bf16.msra.mxu1 %v2107_v0  ;;  %2078 = vmatprep.subr.bf16.mxu0 %v2077_v1  ;;  %v403_v32 = vld [vmem:[#allocation5 + $0x78] sm:$0xff]  ;;  %v434_v33 = vld [vmem:[#allocation5 + $0x170] sm:$0xff]  ;;  %v2117_v38 = vpack.c.bf16 %v451_v26, %v450_v25  ;;  %v453_v41 = vld [vmem:[#allocation5 + $0x208] sm:$0xff] }
  0x9c   : > { %2110 = vmatprep.subr.bf16.mxu1 %v2109_v5  ;;  %v2879_v30 = vsel %vm345_vm0, %v346_v22, %v347_v23  ;;  %v352_v31 = vsel %vm345_vm0, 0.0, %v346_v22  ;;  %v435_v39 = vld [vmem:[#allocation5 + $0x178] sm:$0xff]  ;;  %v2087_v44 = vpack.c.bf16 %v403_v32, %v402_v29  ;;  %v2887_v45 = vsel %vm345_vm0, %v347_v23, 0.0  ;;  %v454_v50 = vld [vmem:[#allocation5 + $0x210] sm:$0xff]  ;;  %v456_v58 = vld [vmem:[#allocation5 + $0x220] sm:$0xff] }
  0x9d   : > { %v357_v34 = vrot.slane %v352_v31, 1  ;;  %v358_v35 = vrot.slane %v2879_v30, 1  ;;  %v373_v36 = vrot.slane %v352_v31, 3  ;;  %v374_v37 = vrot.slane %v2879_v30, 3  ;;  %v455_v51 = vld [vmem:[#allocation5 + $0x218] sm:$0xff]  ;;  %v457_v59 = vld [vmem:[#allocation5 + $0x228] sm:$0xff] }
  0x9e   : > { %2080 = vmatpush3.bf16.msra.mxu0 %v2079_v12  ;;  %v2119_v46 = vpack.c.bf16 %v435_v39, %v434_v33  ;;  %v365_v47 = vrot.slane %v352_v31, 2  ;;  %v366_v48 = vrot.slane %v2879_v30, 2  ;;  %v2121_v49 = vpack.c.bf16 %v453_v41, %v452_v40  ;;  %v458_v2 = vld [vmem:[#allocation5 + $0x230] sm:$0xff]  ;;  %v459_v3 = vld [vmem:[#allocation5 + $0x238] sm:$0xff]  ;;  %v460_v6 = vld [vmem:[#allocation5 + $0x240] sm:$0xff] }
  0x9f   : > { %2112 = vmatpush3.bf16.msra.mxu1 %v2111_v16  ;;  %2082 = vmatprep.subr.bf16.mxu0 %v2081_v17  ;;  %v359_v42 = vsel %vm356_vm1, %v357_v34, %v358_v35  ;;  %v375_v43 = vsel %vm372_vm2, %v373_v36, %v374_v37  ;;  %v360_v52 = vrot.slane %v2887_v45, 1  ;;  %v376_v53 = vrot.slane %v2887_v45, 3  ;;  %v461_v7 = vld [vmem:[#allocation5 + $0x248] sm:$0xff]  ;;  %v462_v9 = vld [vmem:[#allocation5 + $0x250] sm:$0xff]  ;;  %v463_v10 = vld [vmem:[#allocation5 + $0x258] sm:$0xff] }
  0xa0   : > { %2114 = vmatprep.subr.bf16.mxu1 %v2113_v21  ;;  %532 = vmatprep.mubr.f32.mxu0 %v359_v42  ;;  %v367_v55 = vsel %vm364_vm3, %v365_v47, %v366_v48  ;;  %v2125_v56 = vpack.c.bf16 %v455_v51, %v454_v50  ;;  %v368_v57 = vrot.slane %v2887_v45, 2  ;;  %v381_v61 = vrot.slane %v352_v31, 4  ;;  %v464_v12 = vld [vmem:[#allocation5 + $0x260] sm:$0xff]  ;;  %v465_v13 = vld [vmem:[#allocation5 + $0x268] sm:$0xff]  ;;  %v466_v15 = vld [vmem:[#allocation5 + $0x270] sm:$0xff] }
  0xa1   : > { %607 = vmatprep.mubr.f32.mxu1 %v375_v43  ;;  %v361_v60 = vsel %vm356_vm1, %v358_v35, %v360_v52  ;;  %v382_v62 = vrot.slane %v2879_v30, 4  ;;  %v377_v63 = vsel %vm372_vm2, %v374_v37, %v376_v53  ;;  %v2129_v0 = vpack.c.bf16 %v457_v59, %v456_v58  ;;  %v467_v16 = vld [vmem:[#allocation5 + $0x278] sm:$0xff]  ;;  %v862_v20 = vld [vmem:[#allocation7 + $0x80] sm:$0xff]  ;;  %v863_v21 = vld [vmem:[#allocation7 + $0x88] sm:$0xff] }
  0xa2   : > { %2084 = vmatpush3.bf16.msra.mxu0 %v2083_v24  ;;  %v369_v1 = vsel %vm364_vm3, %v366_v48, %v368_v57  ;;  %v2133_v5 = vpack.c.bf16 %v459_v3, %v458_v2  ;;  %v2137_v8 = vpack.c.bf16 %v461_v7, %v460_v6  ;;  %v2141_v11 = vpack.c.bf16 %v463_v10, %v462_v9  ;;  %v846_v23 = vld [vmem:[#allocation7] sm:$0xff]  ;;  %v847_v24 = vld [vmem:[#allocation7 + $0x8] sm:$0xff]  ;;  %v864_v32 = vld [vmem:[#allocation7 + $0x90] sm:$0xff] }
  0xa3   : > { %2116 = vmatpush3.bf16.msra.mxu1 %v2115_v27  ;;  %2086 = vmatprep.subr.bf16.mxu0 %v2085_v28  ;;  %v383_v4 = vsel %vm380_vm5, %v381_v61, %v382_v62  ;;  %v2145_v14 = vpack.c.bf16 %v465_v13, %v464_v12  ;;  %v2149_v17 = vpack.c.bf16 %v467_v16, %v466_v15  ;;  %v384_v18 = vrot.slane %v2887_v45, 4  ;;  %v894_v25 = vld [vmem:[#allocation7 + $0x180] sm:$0xff]  ;;  %v895_v27 = vld [vmem:[#allocation7 + $0x188] sm:$0xff]  ;;  %v865_v33 = vld [vmem:[#allocation7 + $0x98] sm:$0xff] }
  0xa4   : > { %2118 = vmatprep.subr.bf16.mxu1 %v2117_v38  ;;  %v2155_v26 = vpack.c.bf16 %v847_v24, %v846_v23  ;;  %v878_v28 = vld [vmem:[#allocation7 + $0x100] sm:$0xff]  ;;  %v879_v29 = vld [vmem:[#allocation7 + $0x108] sm:$0xff]  ;;  %v2157_v34 = vpack.c.bf16 %v865_v33, %v864_v32  ;;  %v848_v35 = vld [vmem:[#allocation7 + $0x10] sm:$0xff] }
  0xa5   : > { %v385_v19 = vsel %vm380_vm5, %v382_v62, %v384_v18  ;;  %v2187_v31 = vpack.c.bf16 %v879_v29, %v878_v28  ;;  %v849_v36 = vld [vmem:[#allocation7 + $0x18] sm:$0xff]  ;;  %v896_v37 = vld [vmem:[#allocation7 + $0x190] sm:$0xff]  ;;  %v867_v45 = vld [vmem:[#allocation7 + $0xa8] sm:$0xff] }
  0xa6   : > { %2088 = vmatpush3.bf16.msra.mxu0 %v2087_v44  ;;  %v2159_v38 = vpack.c.bf16 %v849_v36, %v848_v35  ;;  %v897_v39 = vld [vmem:[#allocation7 + $0x198] sm:$0xff]  ;;  %v880_v40 = vld [vmem:[#allocation7 + $0x110] sm:$0xff]  ;;  %v866_v44 = vld [vmem:[#allocation7 + $0xa0] sm:$0xff] }
  0xa7   : > { %2120 = vmatpush3.bf16.msra.mxu1 %v2119_v46  ;;  %2122 = vmatprep.subr.bf16.mxu0 %v2121_v49  ;;  %v881_v41 = vld [vmem:[#allocation7 + $0x118] sm:$0xff]  ;;  %v2189_v42 = vpack.c.bf16 %v897_v39, %v896_v37  ;;  %v2161_v46 = vpack.c.bf16 %v867_v45, %v866_v44  ;;  %v850_v47 = vld [vmem:[#allocation7 + $0x20] sm:$0xff]  ;;  %v851_v48 = vld [vmem:[#allocation7 + $0x28] sm:$0xff] }
  0xa8   : > { %v2191_v43 = vpack.c.bf16 %v881_v41, %v880_v40  ;;  %v2163_v50 = vpack.c.bf16 %v851_v48, %v850_v47  ;;  %v899_v51 = vld [vmem:[#allocation7 + $0x1a8] sm:$0xff]  ;;  %v882_v52 = vld [vmem:[#allocation7 + $0x120] sm:$0xff]  ;;  %v868_v57 = vld [vmem:[#allocation7 + $0xb0] sm:$0xff] }
  0xa9   : > { %1672 = vmatmul.mubr.msk.f32.vlgmr.msra.gmra.mrb[0].mxu0 %vm2893_vm4, %v346_v22  ;;  %v2153_v22 = vpack.c.bf16 %v863_v21, %v862_v20  ;;  %v883_v53 = vld [vmem:[#allocation7 + $0x128] sm:$0xff]  ;;  %v869_v58 = vld [vmem:[#allocation7 + $0xb8] sm:$0xff]  ;;  %v900_v62 = vld [vmem:[#allocation7 + $0x1b0] sm:$0xff] }
  0xaa   : > { %608 = vmatmul.mubr.f32.vlgmr.msra.gmra.mrb[0].mxu1 %v367_v55  ;;  %2124 = vmatpush3.bf16.msra.mxu0 %v2121_v49  ;;  %v898_v49 = vld [vmem:[#allocation7 + $0x1a0] sm:$0xff]  ;;  %v2165_v59 = vpack.c.bf16 %v869_v58, %v868_v57  ;;  %v853_v61 = vld [vmem:[#allocation7 + $0x38] sm:$0xff]  ;;  %v871_v6 = vld [vmem:[#allocation7 + $0xc8] sm:$0xff] }
  0xab   : > { %2126 = vmatprep.subr.bf16.mxu0 %v2125_v56  ;;  %537 = vmatprep.mubr.f32.mxu0 %v361_v60  ;;  %v2193_v55 = vpack.c.bf16 %v899_v51, %v898_v49  ;;  %v852_v60 = vld [vmem:[#allocation7 + $0x30] sm:$0xff]  ;;  %v885_v2 = vld [vmem:[#allocation7 + $0x138] sm:$0xff]  ;;  %v855_v9 = vld [vmem:[#allocation7 + $0x48] sm:$0xff] }
  0xac   : > { %612 = vmatprep.mubr.f32.mxu1 %v377_v63  ;;  %2154 = vmatprep.subr.bf16.mxu1 %v2153_v22  ;;  %v2167_v63 = vpack.c.bf16 %v853_v61, %v852_v60  ;;  %v902_v10 = vld [vmem:[#allocation7 + $0x1c0] sm:$0xff]  ;;  %v903_v12 = vld [vmem:[#allocation7 + $0x1c8] sm:$0xff]  ;;  %v873_v18 = vld [vmem:[#allocation7 + $0xd8] sm:$0xff] }
  0xad   : > { %538 = vmatmul.mubr.f32.gmra.mrb[2].mxu0 %v2879_v30  ;;  %v2185_v30 = vpack.c.bf16 %v895_v27, %v894_v25  ;;  %2156 = vmatpush3.bf16.msra.mxu1 %v2155_v26  ;;  %v886_v13 = vld [vmem:[#allocation7 + $0x140] sm:$0xff]  ;;  %v2201_v15 = vpack.c.bf16 %v903_v12, %v902_v10  ;;  %v856_v20 = vld [vmem:[#allocation7 + $0x50] sm:$0xff]  ;;  %v857_v21 = vld [vmem:[#allocation7 + $0x58] sm:$0xff] }
  0xae   : > { %2128 = vmatpush3.bf16.msra.mxu0 %v2125_v56  ;;  %613 = vmatmul.mubr.f32.gmra.mrb[2].mxu1 %v369_v1  ;;  %v2195_v56 = vpack.c.bf16 %v883_v53, %v882_v52  ;;  %v884_v1 = vld [vmem:[#allocation7 + $0x130] sm:$0xff]  ;;  %v2175_v23 = vpack.c.bf16 %v857_v21, %v856_v20  ;;  %v905_v24 = vld [vmem:[#allocation7 + $0x1d8] sm:$0xff]  ;;  %v874_v29 = vld [vmem:[#allocation7 + $0xe0] sm:$0xff]  ;;  %v2608_v53 = vmov 0.0|0.0  }
  0xaf   : > { %2130 = vmatprep.subr.bf16.mxu0 %v2129_v0  ;;  %1984 = vmatprep.mubr.f32.mxu0 %v383_v4  ;;  %v2199_v4 = vpack.c.bf16 %v885_v2, %v884_v1  ;;  %v904_v22 = vld [vmem:[#allocation7 + $0x1d0] sm:$0xff]  ;;  %v889_v26 = vld [vmem:[#allocation7 + $0x158] sm:$0xff]  ;;  %v858_v32 = vld [vmem:[#allocation7 + $0x60] sm:$0xff] }
  0xb0   : > { %2158 = vmatprep.subr.bf16.mxu1 %v2157_v34  ;;  %v888_v25 = vld [vmem:[#allocation7 + $0x150] sm:$0xff]  ;;  %v2205_v27 = vpack.c.bf16 %v905_v24, %v904_v22  ;;  %v859_v33 = vld [vmem:[#allocation7 + $0x68] sm:$0xff]  ;;  %v906_v34 = vld [vmem:[#allocation7 + $0x1e0] sm:$0xff] }
  0xb1   : > { %2160 = vmatpush3.bf16.msra.mxu1 %v2159_v38  ;;  %v2207_v28 = vpack.c.bf16 %v889_v26, %v888_v25  ;;  %v2179_v35 = vpack.c.bf16 %v859_v33, %v858_v32  ;;  %v907_v36 = vld [vmem:[#allocation7 + $0x1e8] sm:$0xff]  ;;  %v890_v37 = vld [vmem:[#allocation7 + $0x160] sm:$0xff]  ;;  %v876_v41 = vld [vmem:[#allocation7 + $0xf0] sm:$0xff] }
  0xb2   : > { %2132 = vmatpush3.bf16.msra.mxu0 %v2129_v0  ;;  %2162 = vmatprep.subr.bf16.mxu1 %v2161_v46  ;;  %v901_v0 = vld [vmem:[#allocation7 + $0x1b8] sm:$0xff]  ;;  %v891_v38 = vld [vmem:[#allocation7 + $0x168] sm:$0xff]  ;;  %v2209_v39 = vpack.c.bf16 %v907_v36, %v906_v34  ;;  %v908_v46 = vld [vmem:[#allocation7 + $0x1f0] sm:$0xff] }
  0xb3   : > { %2134 = vmatprep.subr.bf16.mxu0 %v2133_v5  ;;  %v2197_v3 = vpack.c.bf16 %v901_v0, %v900_v62  ;;  %v2211_v40 = vpack.c.bf16 %v891_v38, %v890_v37  ;;  %v861_v45 = vld [vmem:[#allocation7 + $0x78] sm:$0xff] }
  0xb4   : > { %v909_v47 = vld [vmem:[#allocation7 + $0x1f8] sm:$0xff] }
  0xb5   : > { %2164 = vmatpush3.bf16.msra.mxu1 %v2163_v50  ;;  %v2213_v49 = vpack.c.bf16 %v909_v47, %v908_v46  ;;  %v892_v50 = vld [vmem:[#allocation7 + $0x170] sm:$0xff]  ;;  %v893_v51 = vld [vmem:[#allocation7 + $0x178] sm:$0xff] }
  0xb6   : > { %2136 = vmatpush3.bf16.msra.mxu0 %v2133_v5  ;;  %2166 = vmatprep.subr.bf16.mxu1 %v2165_v59  ;;  %v870_v5 = vld [vmem:[#allocation7 + $0xc0] sm:$0xff]  ;;  %v2215_v52 = vpack.c.bf16 %v893_v51, %v892_v50 }
  0xb7   : > { %2138 = vmatprep.subr.bf16.mxu0 %v2137_v8  ;;  %v2169_v7 = vpack.c.bf16 %v871_v6, %v870_v5  ;;  %v2609_v5 = vmov 1983009808  }
  0xb8   : > { %v708_v6 = vunpack.c.l.s4 %v2609_v5 }
  0xb9   : > { %2168 = vmatpush3.bf16.msra.mxu1 %v2167_v63 }
  0xba   : > { %2140 = vmatpush3.bf16.msra.mxu0 %v2137_v8  ;;  %v854_v8 = vld [vmem:[#allocation7 + $0x40] sm:$0xff]  ;;  %2170 = vmatprep.subr.bf16.mxu1 %v2169_v7  ;;  %v710_v7 = vlaneseq }
  0xbb   : > { %2142 = vmatprep.subr.bf16.mxu0 %v2141_v11 }
  0xbe   : > { %2144 = vmatpush3.bf16.msra.mxu0 %v2141_v11  ;;  %v2171_v11 = vpack.c.bf16 %v855_v9, %v854_v8  ;;  %v709_v8 = vunpack.c.0.s8 %v708_v6  ;;  %v711_v9 = vshrl.u32 %v710_v7, 7 }
  0xbf   : > { %2146 = vmatprep.subr.bf16.mxu0 %v2145_v14 }
  0xc0   : > { %2172 = vmatpush3.bf16.msra.mxu1 %v2171_v11  ;;  %v1673_v11 = vld [vmem:[%s3031_s2] ss:$0 sm:$0xff] }
  0xc2   : > { %2148 = vmatpush3.bf16.msra.mxu0 %v2145_v14  ;;  %v887_v14 = vld [vmem:[#allocation7 + $0x148] sm:$0xff] }
  0xc3   : > { %2150 = vmatprep.subr.bf16.mxu0 %v2149_v17  ;;  %v2203_v16 = vpack.c.bf16 %v887_v14, %v886_v13 }
  0xc6   : > { %2152 = vmatpush3.bf16.msra.mxu0 %v2149_v17  ;;  %v872_v17 = vld [vmem:[#allocation7 + $0xd0] sm:$0xff] }
  0xc7   : > { %2186 = vmatprep.subr.bf16.mxu0 %v2185_v30  ;;  %v875_v30 = vld [vmem:[#allocation7 + $0xe8] sm:$0xff] }
  0xc9   : > { %1985 = vmatmul.mubr.f32.vlgmr.msra.gmra.mrb[4].mxu0 %v385_v19  ;;  %v2173_v19 = vpack.c.bf16 %v873_v18, %v872_v17 }
  0xca   : > { %2188 = vmatpush3.bf16.msra.mxu0 %v2187_v31  ;;  %v2177_v31 = vpack.c.bf16 %v875_v30, %v874_v29 }
  0xcb   : > { %2190 = vmatprep.subr.bf16.mxu0 %v2189_v42  ;;  %2174 = vmatprep.subr.bf16.mxu1 %v2173_v19  ;;  %v877_v42 = vld [vmem:[#allocation7 + $0xf8] sm:$0xff] }
  0xcc   : > { %2176 = vmatpush3.bf16.msra.mxu1 %v2175_v23  ;;  %v2181_v44 = vpack.c.bf16 %v877_v42, %v876_v41 }
  0xcd   : > { %2178 = vmatprep.subr.bf16.mxu1 %v2177_v31 }
  0xce   : > { %2192 = vmatpush3.bf16.msra.mxu0 %v2191_v43  ;;  %v860_v43 = vld [vmem:[#allocation7 + $0x70] sm:$0xff] }
  0xcf   : > { %2194 = vmatprep.subr.bf16.mxu0 %v2193_v55  ;;  %v2183_v48 = vpack.c.bf16 %v861_v45, %v860_v43 }
  0xd0   : > { %2180 = vmatpush3.bf16.msra.mxu1 %v2179_v35 }
  0xd1   : > { %2182 = vmatprep.subr.bf16.mxu1 %v2181_v44 }
  0xd2   : > { %2196 = vmatpush3.bf16.msra.mxu0 %v2195_v56 }
  0xd3   : > { %2198 = vmatprep.subr.bf16.mxu0 %v2197_v3 }
  0xd4   : > { %2184 = vmatpush3.bf16.msra.mxu1 %v2183_v48 }
  0xd5   : > { %2217 = vmatprep.subr.bf16.mxu1 %v2608_v53 }
  0xd6   : > { %2200 = vmatpush3.bf16.msra.mxu0 %v2199_v4 }
  0xd7   : > { %2202 = vmatprep.subr.bf16.mxu0 %v2201_v15 }
  0xda   : > { %2204 = vmatpush3.bf16.msra.mxu0 %v2203_v16  ;;  %v2913_v16 = vsub.s32 %v709_v8, %v711_v9 }
  0xdb   : > { %2206 = vmatprep.subr.bf16.mxu0 %v2205_v27 }
  0xde   : > { %2208 = vmatpush3.bf16.msra.mxu0 %v2207_v28 }
  0xdf   : > { %2210 = vmatprep.subr.bf16.mxu0 %v2209_v39 }
  0xe2   : > { %2212 = vmatpush3.bf16.msra.mxu0 %v2211_v40 }
  0xe3   : > { %2214 = vmatprep.subr.bf16.mxu0 %v2213_v49 }
  0xe6   : > { %2216 = vmatpush3.bf16.msra.mxu0 %v2215_v52 }
 0x17c   : > { %v1716_v55 = vpop.f32.mrb[0].mxu0 }
 0x17d   : > { %v1754_v56 = vpop.f32.mrb[0].mxu1  ;;  %v1717_v57 = vpop.f32.mrb[1].mxu0 }
 0x17e   : > { %v1718_v58 = vadd.f32 %v1717_v57, %v1716_v55  ;;  %v1755_v59 = vpop.f32.mrb[1].mxu1 }
 0x17f   : > { %v1756_v60 = vadd.f32 %v1755_v59, %v1754_v56 }
 0x180   : > { %v1719_v61 = vpop.f32.mrb[2].mxu0 }
 0x181   : > { %v1757_v62 = vpop.f32.mrb[2].mxu1  ;;  %v1720_v63 = vpop.f32.mrb[3].mxu0  ;;  %v610_v0 = vadd.f32 %v1756_v60, %v1718_v58 }
 0x182   : > { %v1721_v1 = vadd.f32 %v1720_v63, %v1719_v61  ;;  %v1758_v2 = vpop.f32.mrb[3].mxu1 }
 0x183   : > { %v1759_v3 = vadd.f32 %v1758_v2, %v1757_v62 }
 0x185   : > { %v615_v4 = vadd.f32 %v1759_v3, %v1721_v1 }
 0x19c   : > { %v1986_v10 = vpop.f32.mrb[4].mxu0 }
 0x19d   : > { %v690_v12 = vadd.f32 %v1986_v10, %v615_v4  ;;  %v684_v13 = vpop.f32.mrb[5].mxu0 }
 0x19e   : > { %v685_v14 = vadd.f32 %v684_v13, %v610_v0 }
 0x19f   : > { %v701_v15 = vadd.f32 %v1673_v11, %v690_v12 }
 0x1a0   : > { %v700_v17 = vadd.f32 %v1673_v11, %v685_v14 }
 0x1a1   : > { %v703_v18 = vmax.f32 %v701_v15, 0.0 }
 0x1a2   : > { %v702_v19 = vmax.f32 %v700_v17, 0.0 }
 0x1a3   : > { %v723_v20 = vcombine.high %v703_v18, %v703_v18  ;;  %v730_v21 = vrot.slane %v703_v18, %v2913_v16 }
 0x1a4   : > { %v706_v22 = vcombine.high %v702_v19, %v702_v19  ;;  %v713_v23 = vrot.slane %v702_v19, %v2913_v16 }
 0x1a5   : > { %v737_v24 = vrot.slane %v723_v20, %v2913_v16  ;;  %v738_v25 = vcombine.high %v730_v21, %v730_v21  ;;  %v776_v26 = vsel %vm345_vm0, %v730_v21, -inf }
 0x1a6   : > { %v777_v27 = vrot.slane %v776_v26, 4  ;;  %v720_v28 = vrot.slane %v706_v22, %v2913_v16  ;;  %v721_v29 = vcombine.high %v713_v23, %v713_v23  ;;  %v748_v30 = vsel %vm345_vm0, %v713_v23, -inf }
 0x1a7   : > { %v739_v31 = vcombine.high %v737_v24, %v737_v24  ;;  %v783_v32 = vsel %vm345_vm0, %v738_v25, -inf  ;;  %v790_v33 = vsel %vm345_vm0, %v737_v24, -inf  ;;  %v749_v34 = vrot.slane %v748_v30, 4 }
 0x1a8   : > { %v778_v35 = vmax.f32 %v776_v26, %v777_v27  ;;  %v784_v36 = vrot.slane %v783_v32, 4  ;;  %v791_v37 = vrot.slane %v790_v33, 4  ;;  %v722_v38 = vcombine.high %v720_v28, %v720_v28 }
 0x1a9   : > { %v797_v39 = vsel %vm345_vm0, %v739_v31, -inf  ;;  %v750_v40 = vmax.f32 %v748_v30, %v749_v34  ;;  %v755_v41 = vsel %vm345_vm0, %v721_v29, -inf  ;;  %v762_v42 = vsel %vm345_vm0, %v720_v28, -inf  ;;  %v911_v34 = vld [vmem:[#allocation7 + $0x208] sm:$0xff] }
 0x1aa   : > { %v785_v43 = vmax.f32 %v783_v32, %v784_v36  ;;  %v792_v44 = vmax.f32 %v790_v33, %v791_v37  ;;  %v798_v45 = vrot.slane %v797_v39, 4  ;;  %v756_v47 = vrot.slane %v755_v41, 4  ;;  %v910_v33 = vld [vmem:[#allocation7 + $0x200] sm:$0xff] }
 0x1ab   : > { %v751_v46 = vrot.slane %v750_v40, 2  ;;  %v763_v48 = vrot.slane %v762_v42, 4  ;;  %v769_v49 = vsel %vm345_vm0, %v722_v38, -inf  ;;  %v779_v50 = vrot.slane %v778_v35, 2 }
 0x1ac   : > { %v786_v51 = vrot.slane %v785_v43, 2  ;;  %v793_v52 = vrot.slane %v792_v44, 2  ;;  %v799_v55 = vmax.f32 %v797_v39, %v798_v45  ;;  %v757_v57 = vmax.f32 %v755_v41, %v756_v47  ;;  %v912_v47 = vld [vmem:[#allocation7 + $0x210] sm:$0xff] }
 0x1ad   : > { %v752_v56 = vmax.f32 %v750_v40, %v751_v46  ;;  %v764_v58 = vmax.f32 %v762_v42, %v763_v48  ;;  %v770_v59 = vrot.slane %v769_v49, 4  ;;  %v780_v1 = vmax.f32 %v778_v35, %v779_v50  ;;  %v913_v48 = vld [vmem:[#allocation7 + $0x218] sm:$0xff] }
 0x1ae   : > { %v794_v60 = vmax.f32 %v792_v44, %v793_v52  ;;  %v800_v61 = vrot.slane %v799_v55, 2  ;;  %v758_v62 = vrot.slane %v757_v57, 2  ;;  %v787_v2 = vmax.f32 %v785_v43, %v786_v51  ;;  %v914_v52 = vld [vmem:[#allocation7 + $0x220] sm:$0xff] }
 0x1af   : > { %v765_v63 = vrot.slane %v764_v58, 2  ;;  %v771_v0 = vmax.f32 %v769_v49, %v770_v59  ;;  %v753_v5 = vrot.slane %v752_v56, 1  ;;  %v781_v13 = vrot.slane %v780_v1, 1  ;;  %v918_v59 = vld [vmem:[#allocation7 + $0x240] sm:$0xff] }
 0x1b0   : > { %v795_v3 = vrot.slane %v794_v60, 1  ;;  %v801_v4 = vmax.f32 %v799_v55, %v800_v61  ;;  %v759_v6 = vmax.f32 %v757_v57, %v758_v62  ;;  %v788_v14 = vrot.slane %v787_v2, 1  ;;  %v915_v55 = vld [vmem:[#allocation7 + $0x228] sm:$0xff]  ;;  %v916_v57 = vld [vmem:[#allocation7 + $0x230] sm:$0xff] }
 0x1b1   : > { %v766_v7 = vmax.f32 %v764_v58, %v765_v63  ;;  %v772_v8 = vrot.slane %v771_v0, 2  ;;  %v754_v18 = vmax.f32 %v752_v56, %v753_v5  ;;  %v782_v25 = vmax.f32 %v780_v1, %v781_v13  ;;  %v917_v58 = vld [vmem:[#allocation7 + $0x238] sm:$0xff]  ;;  %v920_v62 = vld [vmem:[#allocation7 + $0x250] sm:$0xff]  ;;  %v922_v1 = vld [vmem:[#allocation7 + $0x260] sm:$0xff] }
 0x1b2   : > { %v802_v9 = vrot.slane %v801_v4, 1  ;;  %v760_v10 = vrot.slane %v759_v6, 1  ;;  %v796_v15 = vmax.f32 %v794_v60, %v795_v3  ;;  %v789_v28 = vmax.f32 %v787_v2, %v788_v14  ;;  %v919_v60 = vld [vmem:[#allocation7 + $0x248] sm:$0xff]  ;;  %v921_v63 = vld [vmem:[#allocation7 + $0x258] sm:$0xff] }
 0x1b3   : > { %v767_v11 = vrot.slane %v766_v7, 1  ;;  %v773_v12 = vmax.f32 %v771_v0, %v772_v8  ;;  %v2218_v43 = vpack.c.bf16 %v911_v34, %v910_v33  ;;  %v2221_v50 = vpack.c.bf16 %v913_v48, %v912_v47  ;;  %v923_v2 = vld [vmem:[#allocation7 + $0x268] sm:$0xff]  ;;  %v925_v5 = vld [vmem:[#allocation7 + $0x278] sm:$0xff]  ;;  %v1220_v47 = vld [vmem:[#allocation8 + $0x30] sm:$0xff] }
 0x1b4   : > { %v803_v17 = vmax.f32 %v801_v4, %v802_v9  ;;  %v761_v19 = vmax.f32 %v759_v6, %v760_v10  ;;  %v2611_v51 = vmov 0.0   ;;  %v2224_v56 = vpack.c.bf16 %v915_v55, %v914_v52  ;;  %v924_v4 = vld [vmem:[#allocation7 + $0x270] sm:$0xff]  ;;  %v1231_v8 = vld [vmem:[#allocation8 + $0x88] sm:$0xff]  ;;  %v1214_v10 = vld [vmem:[#allocation8] sm:$0xff] }
 0x1b5   : > { %v768_v20 = vmax.f32 %v766_v7, %v767_v11  ;;  %v774_v21 = vrot.slane %v773_v12, 1  ;;  %v2227_v54 = vpack.c.bf16 %v917_v58, %v916_v57  ;;  %v2230_v61 = vpack.c.bf16 %v919_v60, %v918_v59  ;;  %v1230_v7 = vld [vmem:[#allocation8 + $0x80] sm:$0xff]  ;;  %v1215_v11 = vld [vmem:[#allocation8 + $0x8] sm:$0xff]  ;;  %v1221_v48 = vld [vmem:[#allocation8 + $0x38] sm:$0xff] }
 0x1b6   : > { %v823_v22 = vsel %vm822_vm8, %v803_v17, %v796_v15  ;;  %v813_v24 = vsel %vm812_vm6, %v761_v19, %v754_v18  ;;  %v2233_v0 = vpack.c.bf16 %v921_v63, %v920_v62  ;;  %v2236_v3 = vpack.c.bf16 %v923_v2, %v922_v1  ;;  %v1263_v14 = vld [vmem:[#allocation8 + $0x188] sm:$0xff]  ;;  %v1246_v15 = vld [vmem:[#allocation8 + $0x100] sm:$0xff]  ;;  %v1269_v52 = vld [vmem:[#allocation8 + $0x1b8] sm:$0xff] }
 0x1b7   : > { %v775_v23 = vmax.f32 %v773_v12, %v774_v21  ;;  %v815_v26 = vsel %vm814_vm7, %v768_v20, %v813_v24  ;;  %v827_v27 = vsel %vm345_vm0, %v823_v22, 0.0  ;;  %v2239_v6 = vpack.c.bf16 %v925_v5, %v924_v4  ;;  %v1262_v12 = vld [vmem:[#allocation8 + $0x180] sm:$0xff]  ;;  %v1247_v17 = vld [vmem:[#allocation8 + $0x108] sm:$0xff]  ;;  %v1232_v20 = vld [vmem:[#allocation8 + $0x90] sm:$0xff] }
 0x1b8   : > { %v831_v32 = vrot.slane %v827_v27, 1  ;;  %v839_v36 = vrot.slane %v827_v27, 3  ;;  %v835_v37 = vrot.slane %v827_v27, 2  ;;  %v843_v38 = vrot.slane %v827_v27, 4  ;;  %v1233_v21 = vld [vmem:[#allocation8 + $0x98] sm:$0xff]  ;;  %v1235_v33 = vld [vmem:[#allocation8 + $0xa8] sm:$0xff] }
 0x1b9   : > { %v817_v29 = vsel %vm816_vm9, %v775_v23, %v815_v26  ;;  %v2241_v9 = vpack.c.bf16 %v1231_v8, %v1230_v7  ;;  %v2243_v13 = vpack.c.bf16 %v1215_v11, %v1214_v10  ;;  %v2273_v18 = vpack.c.bf16 %v1263_v14, %v1262_v12  ;;  %v1216_v23 = vld [vmem:[#allocation8 + $0x10] sm:$0xff]  ;;  %v1217_v24 = vld [vmem:[#allocation8 + $0x18] sm:$0xff]  ;;  %v1239_v59 = vld [vmem:[#allocation8 + $0xc8] sm:$0xff] }
 0x1ba   : > { %v819_v30 = vsel %vm818_vm10, %v782_v25, %v817_v29  ;;  %v2275_v19 = vpack.c.bf16 %v1247_v17, %v1246_v15  ;;  %v2245_v22 = vpack.c.bf16 %v1233_v21, %v1232_v20  ;;  %v2247_v25 = vpack.c.bf16 %v1217_v24, %v1216_v23  ;;  %v1264_v26 = vld [vmem:[#allocation8 + $0x190] sm:$0xff]  ;;  %v1265_v27 = vld [vmem:[#allocation8 + $0x198] sm:$0xff]  ;;  %v1223_v62 = vld [vmem:[#allocation8 + $0x48] sm:$0xff] }
 0x1bb   : > { %v821_v31 = vsel %vm820_vm11, %v789_v28, %v819_v30  ;;  %2242 = vmatprep.subr.bf16.mxu0 %v2241_v9  ;;  %v1248_v28 = vld [vmem:[#allocation8 + $0x110] sm:$0xff]  ;;  %v2277_v29 = vpack.c.bf16 %v1265_v27, %v1264_v26  ;;  %v1249_v30 = vld [vmem:[#allocation8 + $0x118] sm:$0xff]  ;;  %v1270_v63 = vld [vmem:[#allocation8 + $0x1c0] sm:$0xff] }
 0x1bc   : > { %v826_v35 = vsel %vm345_vm0, 0.0, %v821_v31  ;;  %v1252_v55 = vld [vmem:[#allocation8 + $0x130] sm:$0xff]  ;;  %v1271_v1 = vld [vmem:[#allocation8 + $0x1c8] sm:$0xff]  ;;  %v1254_v2 = vld [vmem:[#allocation8 + $0x140] sm:$0xff] }
 0x1bd   : > { %v830_v39 = vrot.slane %v826_v35, 1  ;;  %v838_v40 = vrot.slane %v826_v35, 3  ;;  %v834_v41 = vrot.slane %v826_v35, 2  ;;  %v842_v42 = vrot.slane %v826_v35, 4  ;;  %v1218_v35 = vld [vmem:[#allocation8 + $0x20] sm:$0xff]  ;;  %v1241_v7 = vld [vmem:[#allocation8 + $0xd8] sm:$0xff] }
 0x1be   : > { %v2289_v4 = vpack.c.bf16 %v1271_v1, %v1270_v63  ;;  %v1224_v9 = vld [vmem:[#allocation8 + $0x50] sm:$0xff]  ;;  %v1225_v10 = vld [vmem:[#allocation8 + $0x58] sm:$0xff]  ;;  %v1243_v20 = vld [vmem:[#allocation8 + $0xe8] sm:$0xff] }
 0x1bf   : > { %v832_v44 = vsel %vm356_vm1, %v830_v39, %v831_v32  ;;  %v840_v45 = vsel %vm372_vm2, %v838_v40, %v839_v36  ;;  %v836_v46 = vsel %vm364_vm3, %v834_v41, %v835_v37  ;;  %v844_v49 = vsel %vm380_vm5, %v842_v42, %v843_v38  ;;  %v1234_v32 = vld [vmem:[#allocation8 + $0xa0] sm:$0xff]  ;;  %v1219_v36 = vld [vmem:[#allocation8 + $0x28] sm:$0xff]  ;;  %v1272_v11 = vld [vmem:[#allocation8 + $0x1d0] sm:$0xff] }
 0x1c0   : > { %990 = vmatprep.mubr.f32.mxu1 %v832_v44  ;;  %1060 = vmatprep.mubr.f32.mxu0 %v840_v45  ;;  %v2249_v34 = vpack.c.bf16 %v1235_v33, %v1234_v32  ;;  %v1266_v37 = vld [vmem:[#allocation8 + $0x1a0] sm:$0xff]  ;;  %v2251_v38 = vpack.c.bf16 %v1219_v36, %v1218_v35  ;;  %v1267_v39 = vld [vmem:[#allocation8 + $0x1a8] sm:$0xff]  ;;  %v1236_v44 = vld [vmem:[#allocation8 + $0xb0] sm:$0xff]  ;;  %v2263_v12 = vpack.c.bf16 %v1225_v10, %v1224_v9 }
 0x1c1   : > { %1675 = vmatmul.mubr.msk.f32.vlgmr.msra.gmra.mrb[4].mxu1 %vm2893_vm4, %v821_v31  ;;  %1061 = vmatmul.mubr.f32.vlgmr.msra.gmra.mrb[6].mxu0 %v836_v46  ;;  %v2279_v31 = vpack.c.bf16 %v1249_v30, %v1248_v28  ;;  %v1250_v40 = vld [vmem:[#allocation8 + $0x120] sm:$0xff]  ;;  %v1251_v41 = vld [vmem:[#allocation8 + $0x128] sm:$0xff]  ;;  %v2281_v42 = vpack.c.bf16 %v1267_v39, %v1266_v37  ;;  %v1237_v45 = vld [vmem:[#allocation8 + $0xb8] sm:$0xff] }
 0x1c2   : > { %2219 = vmatpush3.bf16.msra.mxu1 %v2218_v43  ;;  %2019 = vmatprep.mubr.msk.f32.mxu1 %vm2610_vm12, %v2611_v51  ;;  %v2283_v43 = vpack.c.bf16 %v1251_v41, %v1250_v40  ;;  %v2253_v46 = vpack.c.bf16 %v1237_v45, %v1236_v44  ;;  %v1256_v14 = vld [vmem:[#allocation8 + $0x150] sm:$0xff]  ;;  %v1257_v15 = vld [vmem:[#allocation8 + $0x158] sm:$0xff]  ;;  %v1227_v23 = vld [vmem:[#allocation8 + $0x68] sm:$0xff] }
 0x1c3   : > { %2220 = vmatprep.subr.bf16.mxu1 %v2608_v53  ;;  %2244 = vmatpush3.bf16.msra.mxu0 %v2243_v13  ;;  %v1273_v13 = vld [vmem:[#allocation8 + $0x1d8] sm:$0xff]  ;;  %v1274_v24 = vld [vmem:[#allocation8 + $0x1e0] sm:$0xff]  ;;  %v1275_v26 = vld [vmem:[#allocation8 + $0x1e8] sm:$0xff] }
 0x1c4   : > { %2246 = vmatprep.subr.bf16.mxu0 %v2245_v22  ;;  %v2293_v17 = vpack.c.bf16 %v1273_v13, %v1272_v11  ;;  %v1226_v22 = vld [vmem:[#allocation8 + $0x60] sm:$0xff]  ;;  %v1259_v28 = vld [vmem:[#allocation8 + $0x168] sm:$0xff]  ;;  %v1245_v32 = vld [vmem:[#allocation8 + $0xf8] sm:$0xff] }
 0x1c5   : > { %v1258_v27 = vld [vmem:[#allocation8 + $0x160] sm:$0xff]  ;;  %v1228_v33 = vld [vmem:[#allocation8 + $0x70] sm:$0xff]  ;;  %v1229_v35 = vld [vmem:[#allocation8 + $0x78] sm:$0xff] }
 0x1c6   : > { %2222 = vmatpush3.bf16.msra.mxu1 %v2221_v50  ;;  %v2255_v50 = vpack.c.bf16 %v1221_v48, %v1220_v47  ;;  %v2299_v30 = vpack.c.bf16 %v1259_v28, %v1258_v27  ;;  %v1276_v36 = vld [vmem:[#allocation8 + $0x1f0] sm:$0xff]  ;;  %v1277_v37 = vld [vmem:[#allocation8 + $0x1f8] sm:$0xff] }
 0x1c7   : > { %2223 = vmatprep.subr.bf16.mxu1 %v2608_v53  ;;  %2248 = vmatpush3.bf16.msra.mxu0 %v2247_v25  ;;  %v2267_v25 = vpack.c.bf16 %v1227_v23, %v1226_v22  ;;  %v2301_v39 = vpack.c.bf16 %v1277_v37, %v1276_v36  ;;  %v1260_v40 = vld [vmem:[#allocation8 + $0x170] sm:$0xff]  ;;  %v1261_v41 = vld [vmem:[#allocation8 + $0x178] sm:$0xff] }
 0x1c8   : > { %2250 = vmatprep.subr.bf16.mxu0 %v2249_v34 }
 0x1ca   : > { %2225 = vmatpush3.bf16.msra.mxu1 %v2224_v56  ;;  %v1253_v56 = vld [vmem:[#allocation8 + $0x138] sm:$0xff] }
 0x1cb   : > { %2226 = vmatprep.subr.bf16.mxu1 %v2608_v53  ;;  %2252 = vmatpush3.bf16.msra.mxu0 %v2251_v38  ;;  %v2287_v58 = vpack.c.bf16 %v1253_v56, %v1252_v55  ;;  %v2271_v38 = vpack.c.bf16 %v1229_v35, %v1228_v33 }
 0x1cc   : > { %2254 = vmatprep.subr.bf16.mxu0 %v2253_v46 }
 0x1ce   : > { %2228 = vmatpush3.bf16.msra.mxu1 %v2227_v54  ;;  %v1238_v54 = vld [vmem:[#allocation8 + $0xc0] sm:$0xff] }
 0x1cf   : > { %2229 = vmatprep.subr.bf16.mxu1 %v2608_v53  ;;  %2256 = vmatpush3.bf16.msra.mxu0 %v2255_v50  ;;  %v2257_v60 = vpack.c.bf16 %v1239_v59, %v1238_v54 }
 0x1d1   : > { %2258 = vmatprep.subr.bf16.mxu0 %v2257_v60 }
 0x1d2   : > { %2231 = vmatpush3.bf16.msra.mxu1 %v2230_v61  ;;  %v1222_v61 = vld [vmem:[#allocation8 + $0x40] sm:$0xff] }
 0x1d3   : > { %2232 = vmatprep.subr.bf16.mxu1 %v2608_v53 }
 0x1d6   : > { %2234 = vmatpush3.bf16.msra.mxu1 %v2233_v0  ;;  %v2259_v0 = vpack.c.bf16 %v1223_v62, %v1222_v61 }
 0x1d7   : > { %2235 = vmatprep.subr.bf16.mxu1 %v2608_v53 }
 0x1d8   : > { %2260 = vmatpush3.bf16.msra.mxu0 %v2259_v0 }
 0x1da   : > { %2237 = vmatpush3.bf16.msra.mxu1 %v2236_v3  ;;  %v1255_v3 = vld [vmem:[#allocation8 + $0x148] sm:$0xff] }
 0x1db   : > { %2238 = vmatprep.subr.bf16.mxu1 %v2608_v53  ;;  %v2291_v5 = vpack.c.bf16 %v1255_v3, %v1254_v2 }
 0x1de   : > { %2240 = vmatpush3.bf16.msra.mxu1 %v2239_v6  ;;  %v1240_v6 = vld [vmem:[#allocation8 + $0xd0] sm:$0xff] }
 0x1df   : > { %2274 = vmatprep.subr.bf16.mxu1 %v2273_v18  ;;  %v2261_v8 = vpack.c.bf16 %v1241_v7, %v1240_v6  ;;  %v2295_v18 = vpack.c.bf16 %v1257_v15, %v1256_v14 }
 0x1e1   : > { %2020 = vmatmul.mubr.f32.vlgmr.msra.gmra.mrb[6].mxu1 %v844_v49  ;;  %v1268_v49 = vld [vmem:[#allocation8 + $0x1b0] sm:$0xff]  ;;  %2262 = vmatprep.subr.bf16.mxu0 %v2261_v8 }
 0x1e2   : > { %2276 = vmatpush3.bf16.msra.mxu1 %v2275_v19  ;;  %v2285_v57 = vpack.c.bf16 %v1269_v52, %v1268_v49  ;;  %2264 = vmatpush3.bf16.msra.mxu0 %v2263_v12  ;;  %v1242_v19 = vld [vmem:[#allocation8 + $0xe0] sm:$0xff] }
 0x1e3   : > { %2278 = vmatprep.subr.bf16.mxu1 %v2277_v29  ;;  %v2265_v21 = vpack.c.bf16 %v1243_v20, %v1242_v19  ;;  %v2297_v29 = vpack.c.bf16 %v1275_v26, %v1274_v24  ;;  %v1676_v52 = vld [vmem:[%s3033_s4] ss:$0 sm:$0xff] }
 0x1e5   : > { %2266 = vmatprep.subr.bf16.mxu0 %v2265_v21 }
 0x1e6   : > { %2280 = vmatpush3.bf16.msra.mxu1 %v2279_v31  ;;  %v1244_v31 = vld [vmem:[#allocation8 + $0xf0] sm:$0xff]  ;;  %2268 = vmatpush3.bf16.msra.mxu0 %v2267_v25 }
 0x1e7   : > { %2282 = vmatprep.subr.bf16.mxu1 %v2281_v42  ;;  %v2269_v34 = vpack.c.bf16 %v1245_v32, %v1244_v31  ;;  %v2303_v42 = vpack.c.bf16 %v1261_v41, %v1260_v40  ;;  %v1278_v31 = vld [vmem:[#allocation8 + $0x200] sm:$0xff]  ;;  %v1279_v32 = vld [vmem:[#allocation8 + $0x208] sm:$0xff]  ;;  %v1281_v40 = vld [vmem:[#allocation8 + $0x218] sm:$0xff] }
 0x1e9   : > { %2270 = vmatprep.subr.bf16.mxu0 %v2269_v34 }
 0x1ea   : > { %2284 = vmatpush3.bf16.msra.mxu1 %v2283_v43  ;;  %2272 = vmatpush3.bf16.msra.mxu0 %v2271_v38  ;;  %v2306_v38 = vpack.c.bf16 %v1279_v32, %v1278_v31 }
 0x1eb   : > { %2286 = vmatprep.subr.bf16.mxu1 %v2285_v57  ;;  %2305 = vmatprep.subr.bf16.mxu0 %v2608_v53 }
 0x1ee   : > { %2288 = vmatpush3.bf16.msra.mxu1 %v2287_v58 }
 0x1ef   : > { %2290 = vmatprep.subr.bf16.mxu1 %v2289_v4 }
 0x1f2   : > { %2292 = vmatpush3.bf16.msra.mxu1 %v2291_v5 }
 0x1f3   : > { %2294 = vmatprep.subr.bf16.mxu1 %v2293_v17 }
 0x1f6   : > { %2296 = vmatpush3.bf16.msra.mxu1 %v2295_v18 }
 0x1f7   : > { %2298 = vmatprep.subr.bf16.mxu1 %v2297_v29 }
 0x1fa   : > { %2300 = vmatpush3.bf16.msra.mxu1 %v2299_v30 }
 0x1fb   : > { %2302 = vmatprep.subr.bf16.mxu1 %v2301_v39  ;;  %v1280_v39 = vld [vmem:[#allocation8 + $0x210] sm:$0xff] }
 0x1fc   : > { %v2309_v41 = vpack.c.bf16 %v1281_v40, %v1280_v39 }
 0x1fe   : > { %2304 = vmatpush3.bf16.msra.mxu1 %v2303_v42  ;;  %v1282_v42 = vld [vmem:[#allocation8 + $0x220] sm:$0xff] }
 0x294   : > { %v1810_v43 = vpop.f32.mrb[4].mxu1  ;;  %v1845_v44 = vpop.f32.mrb[6].mxu0 }
 0x295   : > { %v1811_v45 = vpop.f32.mrb[5].mxu1  ;;  %v1846_v46 = vpop.f32.mrb[7].mxu0 }
 0x296   : > { %v1812_v47 = vadd.f32 %v1811_v45, %v1810_v43  ;;  %v1847_v48 = vadd.f32 %v1846_v46, %v1845_v44  ;;  %v1283_v43 = vld [vmem:[#allocation8 + $0x228] sm:$0xff]  ;;  %v1284_v45 = vld [vmem:[#allocation8 + $0x230] sm:$0xff]  ;;  %v1285_v46 = vld [vmem:[#allocation8 + $0x238] sm:$0xff] }
 0x297   : > { %v2312_v44 = vpack.c.bf16 %v1283_v43, %v1282_v42 }
 0x298   : > { %v1063_v49 = vadd.f32 %v1847_v48, %v1812_v47  ;;  %v2315_v47 = vpack.c.bf16 %v1285_v46, %v1284_v45  ;;  %v1286_v48 = vld [vmem:[#allocation8 + $0x240] sm:$0xff] }
 0x2b4   : > { %v1132_v50 = vpop.f32.mrb[6].mxu1 }
 0x2b5   : > { %v1133_v55 = vadd.f32 %v1132_v50, %v1063_v49  ;;  %v2021_v56 = vpop.f32.mrb[7].mxu1  ;;  %v1287_v49 = vld [vmem:[#allocation8 + $0x248] sm:$0xff] }
 0x2b6   : > { %v2318_v50 = vpack.c.bf16 %v1287_v49, %v1286_v48  ;;  %v1290_v56 = vld [vmem:[#allocation8 + $0x260] sm:$0xff] }
 0x2b7   : > { %v1143_v57 = vadd.f32 %v1676_v52, %v1133_v55  ;;  %v1289_v52 = vld [vmem:[#allocation8 + $0x258] sm:$0xff] }
 0x2b9   : > { %v1144_v58 = vmax.f32 %v1143_v57, 0.0  ;;  %v1291_v57 = vld [vmem:[#allocation8 + $0x268] sm:$0xff] }
 0x2bb   : > { %v1146_v54 = vcombine.high %v1144_v58, %v1144_v58  ;;  %v1153_v59 = vrot.slane %v1144_v58, %v2913_v16  ;;  %v2324_v58 = vpack.c.bf16 %v1291_v57, %v1290_v56 }
 0x2bd   : > { %v1160_v60 = vrot.slane %v1146_v54, %v2913_v16  ;;  %v1161_v61 = vcombine.high %v1153_v59, %v1153_v59  ;;  %v1167_v62 = vsel %vm345_vm0, %v1153_v59, -inf  ;;  %v1292_v54 = vld [vmem:[#allocation8 + $0x270] sm:$0xff]  ;;  %v1293_v59 = vld [vmem:[#allocation8 + $0x278] sm:$0xff] }
 0x2be   : > { %v1168_v63 = vrot.slane %v1167_v62, 4 }
 0x2bf   : > { %v1162_v0 = vcombine.high %v1160_v60, %v1160_v60  ;;  %v1174_v1 = vsel %vm345_vm0, %v1161_v61, -inf  ;;  %v1181_v2 = vsel %vm345_vm0, %v1160_v60, -inf  ;;  %v2327_v60 = vpack.c.bf16 %v1293_v59, %v1292_v54 }
 0x2c0   : > { %v1169_v3 = vmax.f32 %v1167_v62, %v1168_v63  ;;  %v1175_v4 = vrot.slane %v1174_v1, 4  ;;  %v1182_v5 = vrot.slane %v1181_v2, 4 }
 0x2c1   : > { %v1188_v6 = vsel %vm345_vm0, %v1162_v0, -inf }
 0x2c2   : > { %v1170_v7 = vrot.slane %v1169_v3, 2  ;;  %v1176_v8 = vmax.f32 %v1174_v1, %v1175_v4  ;;  %v1183_v9 = vmax.f32 %v1181_v2, %v1182_v5  ;;  %v1189_v10 = vrot.slane %v1188_v6, 4 }
 0x2c4   : > { %v1171_v11 = vmax.f32 %v1169_v3, %v1170_v7  ;;  %v1177_v12 = vrot.slane %v1176_v8, 2  ;;  %v1184_v13 = vrot.slane %v1183_v9, 2  ;;  %v1190_v14 = vmax.f32 %v1188_v6, %v1189_v10  ;;  %v1678_v6 = vld [vmem:[%s3035_s6] ss:$0 sm:$0xff] }
 0x2c6   : > { %v1172_v15 = vrot.slane %v1171_v11, 1  ;;  %v1178_v17 = vmax.f32 %v1176_v8, %v1177_v12  ;;  %v1185_v18 = vmax.f32 %v1183_v9, %v1184_v13  ;;  %v1191_v19 = vrot.slane %v1190_v14, 2 }
 0x2c8   : > { %v1179_v20 = vrot.slane %v1178_v17, 1  ;;  %v1186_v21 = vrot.slane %v1185_v18, 1  ;;  %v1192_v22 = vmax.f32 %v1190_v14, %v1191_v19  ;;  %v1173_v23 = vmax.f32 %v1171_v11, %v1172_v15 }
 0x2ca   : > { %v1180_v24 = vmax.f32 %v1178_v17, %v1179_v20  ;;  %v1187_v25 = vmax.f32 %v1185_v18, %v1186_v21  ;;  %v1193_v26 = vrot.slane %v1192_v22, 1 }
 0x2cc   : > { %v1194_v27 = vmax.f32 %v1192_v22, %v1193_v26  ;;  %v1199_v28 = vsel %vm812_vm6, %v1180_v24, %v1173_v23 }
 0x2cd   : > { %v1200_v29 = vsel %vm814_vm7, %v1187_v25, %v1199_v28 }
 0x2ce   : > { %v1201_v30 = vsel %vm816_vm9, %v1194_v27, %v1200_v29 }
 0x2cf   : > { %v1203_v33 = vsel %vm345_vm0, 0.0, %v1201_v30 }
 0x2d0   : > { %v1204_v34 = vsel %vm364_vm3, %v1203_v33, 0.0 }
 0x2d1   : > { %v1206_v35 = vrot.slane %v1204_v34, 1  ;;  %v1210_v36 = vrot.slane %v1204_v34, 3  ;;  %v1208_v37 = vrot.slane %v1204_v34, 2  ;;  %v1212_v61 = vrot.slane %v1204_v34, 4 }
 0x2d3   : > { %1358 = vmatprep.mubr.f32.mxu0 %v1206_v35  ;;  %1428 = vmatprep.mubr.f32.mxu1 %v1210_v36 }
 0x2d4   : > { %1677 = vmatmul.mubr.msk.f32.vlgmr.msra.gmra.mrb[8].mxu0 %vm364_vm3, %v1203_v33  ;;  %1429 = vmatmul.mubr.f32.vlgmr.msra.gmra.mrb[8].mxu1 %v1208_v37 }
 0x2d5   : > { %2307 = vmatpush3.bf16.msra.mxu0 %v2306_v38  ;;  %2054 = vmatprep.mubr.msk.f32.mxu0 %vm2610_vm12, %v2611_v51  ;;  %v1288_v51 = vld [vmem:[#allocation8 + $0x250] sm:$0xff] }
 0x2d6   : > { %2308 = vmatprep.subr.bf16.mxu0 %v2608_v53  ;;  %v2321_v55 = vpack.c.bf16 %v1289_v52, %v1288_v51 }
 0x2d9   : > { %2310 = vmatpush3.bf16.msra.mxu0 %v2309_v41 }
 0x2da   : > { %2311 = vmatprep.subr.bf16.mxu0 %v2608_v53 }
 0x2dd   : > { %2313 = vmatpush3.bf16.msra.mxu0 %v2312_v44 }
 0x2de   : > { %2314 = vmatprep.subr.bf16.mxu0 %v2608_v53 }
 0x2e1   : > { %2316 = vmatpush3.bf16.msra.mxu0 %v2315_v47 }
 0x2e2   : > { %2317 = vmatprep.subr.bf16.mxu0 %v2608_v53 }
 0x2e5   : > { %2319 = vmatpush3.bf16.msra.mxu0 %v2318_v50 }
 0x2e6   : > { %2320 = vmatprep.subr.bf16.mxu0 %v2608_v53 }
 0x2e9   : > { %2322 = vmatpush3.bf16.msra.mxu0 %v2321_v55 }
 0x2ea   : > { %2323 = vmatprep.subr.bf16.mxu0 %v2608_v53 }
 0x2ed   : > { %2325 = vmatpush3.bf16.msra.mxu0 %v2324_v58 }
 0x2ee   : > { %2326 = vmatprep.subr.bf16.mxu0 %v2608_v53 }
 0x2f1   : > { %2328 = vmatpush3.bf16.msra.mxu0 %v2327_v60 }
 0x2f4   : > { %2055 = vmatmul.mubr.f32.vlgmr.msra.gmra.mrb[10].mxu0 %v1212_v61 }
 0x3a7   : > { %v1897_v62 = vpop.f32.mrb[8].mxu0  ;;  %v1932_v63 = vpop.f32.mrb[8].mxu1 }
 0x3a8   : > { %v1898_v0 = vpop.f32.mrb[9].mxu0  ;;  %v1933_v1 = vpop.f32.mrb[9].mxu1 }
 0x3a9   : > { %v1899_v2 = vadd.f32 %v1898_v0, %v1897_v62  ;;  %v1934_v3 = vadd.f32 %v1933_v1, %v1932_v63 }
 0x3ab   : > { %v1431_v4 = vadd.f32 %v1934_v3, %v1899_v2 }
 0x3c7   : > { %v1500_v5 = vpop.f32.mrb[10].mxu0 }
 0x3c8   : > { %v1501_v7 = vadd.f32 %v1500_v5, %v1431_v4  ;;  %v2056_v8 = vpop.f32.mrb[11].mxu0 }
 0x3ca   : > { %v1511_v9 = vadd.f32 %v1678_v6, %v1501_v7 }
 0x3cc   : > { %v1512_v53 = vmax.f32 %v1511_v9, 0.0 }
 0x3ce   : > { %v1520_v10 = vrot.slane %v1512_v53, %v2913_v16 }
 0x3d0   : > { %v1521_v11 = vcombine.high %v1520_v10, %v1520_v10  ;;  %v1524_v12 = vsel %vm345_vm0, %v1520_v10, -inf }
 0x3d1   : > { %v1525_v13 = vrot.slane %v1524_v12, 4 }
 0x3d2   : > { %v1531_v14 = vsel %vm345_vm0, %v1521_v11, -inf }
 0x3d3   : > { %v1526_v15 = vmax.f32 %v1524_v12, %v1525_v13  ;;  %v1532_v17 = vrot.slane %v1531_v14, 4 }
 0x3d5   : > { %v1527_v18 = vrot.slane %v1526_v15, 2  ;;  %v1533_v19 = vmax.f32 %v1531_v14, %v1532_v17 }
 0x3d7   : > { %v1528_v20 = vmax.f32 %v1526_v15, %v1527_v18  ;;  %v1534_v21 = vrot.slane %v1533_v19, 2 }
 0x3d9   : > { %v1529_v22 = vrot.slane %v1528_v20, 1  ;;  %v1535_v23 = vmax.f32 %v1533_v19, %v1534_v21 }
 0x3db   : > { %v1536_v24 = vrot.slane %v1535_v23, 1  ;;  %v1530_v16 = vmax.f32 %v1528_v20, %v1529_v22 }
 0x3dd   : > { %v1537_v25 = vmax.f32 %v1535_v23, %v1536_v24 }
 0x3df   : > { %v1540_v26 = vsel %vm822_vm8, %v1537_v25, %v1530_v16 }
 0x3e0   : > { %1542 = vst [vmem:[%s340_s21] sm:$0x3] %v1540_v26 }
 0x3e1   : > { %2539 = shalt.err (!%p2536_p4)
}
 0x3e2   : > { %s2540_s17 = scalar_lea.hbm %s2984_s11, 32  ;;  %s2544_s14 = scalar_lea.hbm %s3036_s7, 64 }
 0x3e3   : > { %p2541_p9 = scmp.ne.s32.totalorder %s2984_s11, %s2540_s17  ;;  %p2545_p8 = scmp.lt.u32.totalorder %s2984_s11, %s3036_s7 }
 0x3e4   : > { %p2546_p13 = scmp.lt.u32.totalorder %s2544_s14, %s2540_s17  ;;  %p2548_p10 = scmp.lt.u32.totalorder %s2540_s17, %s2984_s11 }
 0x3e5   : > { %p2542_p0 = pnand %p2541_p9, %p2807_p5 }
 0x3e6   : > { %p2547_p6 = por %p2546_p13, %p2545_p8 }
 0x3e7   : > { %p2543_p11 = pneg %p2542_p0 }
 0x3e8   : > { %p2549_p3 = por %p2548_p10, %p2547_p6 }
 0x3ea   : > { %p2550_p7 = pnand %p2549_p3, %p2543_p11 }
 0x3ec   : > { %2553 = shalt.err (!%p2550_p7)
}
 0x3ed   : > { %2343 = dma.vmem_to_hbm [thread:$0]  (%p2807_p5), %s2986_s16, 32, %s2984_s11, %s1544_s20  }
 0x3ee PF: > { %s3058_s21 = sld [smem:[#allocation15_spill]]  ;;  %s1569_s29 = sand.u32 1, %s2588_s24  }
 0x3ef   : > { %p3060_p1 = scmp.ge.s32.totalorder %s2600_s27, 2  ;;  %s1570_s23 = scalar_lea.sflag [#allocation4], %s1569_s29 }
 0x3f4   : > { %p3059_p12 = scmp.ne.s32.totalorder %s3058_s21, 0 }
 0x3f6   : > { %p2360_p2 = pnand %p3060_p1, %p3059_p12 }
 0x3f8   : > { %2583 = dma.done.wait (!%p2360_p2), %s1570_s23, 32  }
 0x3f9   : > { %2585 = vsyncadd (!%p2360_p2), %s1570_s23, 4294967264  ;;  %p22_p4 = scmp.ge.s32.totalorder %s2793_s22, 4   ;;  %s3061_s24 = smov %s2592_s25 }
 0x3fa   : > { %s3062_s25 = smov %s2596_s26  ;;  %s3063_s26 = smov %s2803_s18 }
 0x3fb   : > { %s3064_s27 = smov %s2793_s22  ;;  %24 = sbr.rel (!%p22_p4) target bundleno = 7 (0x7), region = 105 }
 0x402   :  { %1575 = vsyncpa [#allocation3], 1 }
 0x403   :  { %1577 = vsyncpa [#allocation3 + $0x1], 1 }
 0x404   :  { %1578 = vsyncpa [#allocation6], 1 }
 0x405   :  { %1579 = vsyncpa [#allocation9], 1 }
 0x406   :  { %1580 = vsyncpa [#allocation4], 1 }
 0x407   :  { %1582 = vsyncpa [#allocation4 + $0x1], 1 }

</bundles_post_ra>
